<compile_context>
chip_gen: v5e
topology: v5e:2x2
jax: 0.10.0
libtpu: 0.0.40
codegen_flags: <defaults>
</compile_context>

<pallas_src>
import jax
import jax.numpy as jnp
from jax.experimental import pallas as pl
from jax.experimental.pallas import tpu as pltpu


# ---------------------------------------------------------------------------
# Packed parameter layout (width = 4H lanes, rows padded to multiples of 8)
#   rows 0:8          W_x  : rows 0..D-1 = w_ih0, row D = b_fc*w_ih0[0],
#                            row D+1 = b0, rest zero   (merged input projection)
#   rows 8:16         misc : row 8 = b1, row 9[:H] = w_fc, row 10[0] = b_fc
#   rows 16:16+2H     layer-0 RHS  [w_hh0 ; W_fb]      (W_fb = w_fc^T ⊗ w_ih0[0])
#   rows 16+2H:16+4H  layer-1 RHS  [w_ih1 ; w_hh1]
# ---------------------------------------------------------------------------
_DP = 8            # padded input-feature width (f32 sublane tile)
_OFF_WX = 0
_OFF_MISC = 8
_OFF_L0 = 16


def pack_params(params):
    """Pack all weights/biases into one lane-dense, 8-row-aligned f32 block."""
    w_ih0 = params["w_ih0"].astype(jnp.float32)        # (D, 4H)
    D, G = w_ih0.shape
    H = G // 4
    assert G % 128 == 0, "4H must be a multiple of 128 (H multiple of 32)"
    assert D + 2 <= _DP, "need two spare flag columns in the padded feature dim"

    w_fc = params["w_fc"].astype(jnp.float32)          # (1, H)
    b_fc = params["b_fc"].astype(jnp.float32)          # (1, 1)
    w_ih0_r0 = w_ih0[0:1, :]                           # (1, 4H) : 'pred' input row

    # merged input-projection weights (+ fold of b0 and b_fc*w_ih0[0] via flags)
    W_x = jnp.zeros((_DP, G), jnp.float32)
    W_x = W_x.at[0:D, :].set(w_ih0)
    W_x = W_x.at[D, :].set(b_fc[0, 0] * w_ih0_r0[0])   # decoder-only flag column
    W_x = W_x.at[D + 1, :].set(params["b0"][0])        # all-rows flag column

    misc = jnp.zeros((8, G), jnp.float32)
    misc = misc.at[0, :].set(params["b1"][0])
    misc = misc.at[1, :H].set(w_fc[0])
    misc = misc.at[2, 0].set(b_fc[0, 0])

    # fc-feedback fold: h1 @ W_fb == (h1 @ w_fc^T) * w_ih0[0,:]
    W_fb = w_fc.T @ w_ih0_r0                           # (H, 4H)

    return jnp.concatenate(
        [W_x,                                          # rows 0:8
         misc,                                         # rows 8:16
         params["w_hh0"].astype(jnp.float32),          # rows 16:16+H
         W_fb,                                         # rows 16+H:16+2H
         params["w_ih1"].astype(jnp.float32),          # rows 16+2H:16+3H
         params["w_hh1"].astype(jnp.float32)],         # rows 16+3H:16+4H
        axis=0)                                        # (16+4H, 4H)


# ---------------------------------------------------------------------------
# Kernel factory: whole forward (encoder + autoregressive decoder) in one
# invocation.  Shapes are tiny -> no grid, everything resident in VMEM.
# ---------------------------------------------------------------------------
def make_kernel(B, T, F, H):
    G = 4 * H
    n_dec = F - 1
    off_l1 = _OFF_L0 + 2 * H

    def forecast_kernel(x_ref, w_ref, out_ref):
        # x_ref : ((T + F - 1) * B, 8)  merged encoder + decoder-future inputs
        # w_ref : (16 + 4H, 4H)         packed parameters
        # out_ref: (F * B, 1)           predictions, time-major

        # ---- one hoisted input projection (b0 / b_fc folds included) ----
        W_x = w_ref[_OFF_WX:_OFF_WX + _DP, :]                       # (8, 4H)
        gates_x = jnp.dot(x_ref[...], W_x,
                          preferred_element_type=jnp.float32)       # (N, 4H)

        # small per-step operands, read straight from the Ref, hoisted once
        b1 = jnp.broadcast_to(w_ref[_OFF_MISC + 0:_OFF_MISC + 1, :], (B, G))
        w_fc = w_ref[_OFF_MISC + 1:_OFF_MISC + 2, 0:H]              # (1, H)
        b_fc = w_ref[_OFF_MISC + 2:_OFF_MISC + 3, 0:1]              # (1, 1)

        w_hh0 = w_ref[_OFF_L0:_OFF_L0 + H, :]                       # (H, 4H)
        W_l0 = w_ref[_OFF_L0:_OFF_L0 + 2 * H, :]                    # [w_hh0; W_fb]
        W_l1 = w_ref[off_l1:off_l1 + 2 * H, :]                      # [w_ih1; w_hh1]

        def activate(gates, c):
            sg = jax.nn.sigmoid(gates)        # one full-width EUP pass
            th = jnp.tanh(gates)              # one full-width EUP pass
            i_g = sg[:, 0:H]
            f_g = sg[:, H:2 * H]
            g_g = th[:, 2 * H:3 * H]
            o_g = sg[:, 3 * H:4 * H]
            c_new = f_g * c + i_g * g_g
            h_new = o_g * jnp.tanh(c_new)
            return h_new, c_new

        def layer1(h0_new, h1, c1):
            # fused K=2H matmul: h0_new@w_ih1 + h1@w_hh1 in one MXU issue
            lhs = jnp.concatenate([h0_new, h1], axis=1)             # (B, 2H)
            g1 = jnp.dot(lhs, W_l1, preferred_element_type=jnp.float32) + b1
            return activate(g1, c1)

        zeros = jnp.zeros((B, H), jnp.float32)
        h0, c0, h1, c1 = zeros, zeros, zeros, zeros

        # ---- encoder: fully unrolled (T small & static) ----
        for t in range(T):
            g0 = gates_x[t * B:(t + 1) * B, :] + jnp.dot(
                h0, w_hh0, preferred_element_type=jnp.float32)
            h0, c0 = activate(g0, c0)
            h1, c1 = layer1(h0, h1, c1)

        h1_hist = [h1]

        # ---- decoder: fc feedback folded into the layer-0 recurrence matmul ----
        base = T * B
        for i in range(n_dec):
            lhs0 = jnp.concatenate([h0, h1], axis=1)                # (B, 2H)
            g0 = gates_x[base + i * B:base + (i + 1) * B, :] + jnp.dot(
                lhs0, W_l0, preferred_element_type=jnp.float32)
            h0, c0 = activate(g0, c0)
            h1, c1 = layer1(h0, h1, c1)
            h1_hist.append(h1)

        # ---- deferred heads: one bulk VPU mul + lane reduce, single store ----
        h1_all = jnp.concatenate(h1_hist, axis=0)                   # (F*B, H)
        out_ref[...] = jnp.sum(h1_all * w_fc, axis=-1, keepdims=True) + b_fc

    return forecast_kernel


# ---------------------------------------------------------------------------
# Wrapper: layout plumbing (batch-first -> time-major, flag columns, padding).
# ---------------------------------------------------------------------------
@jax.jit
def base_forecast_forward(inp, future, packed):
    # inp: (B, T, D)   future: (B, F, D-1)   packed: (16+4H, 4H)
    B, T, D = inp.shape
    F = future.shape[1]
    n_dec = F - 1
    H = (packed.shape[0] - 16) // 4

    # encoder rows: features in cols 0..D-1, bias flag in col D+1
    inp_tm = jnp.transpose(inp, (1, 0, 2)).reshape(T * B, D).astype(jnp.float32)
    enc_x = jnp.zeros((T * B, _DP), jnp.float32)
    enc_x = enc_x.at[:, 0:D].set(inp_tm)
    enc_x = enc_x.at[:, D + 1].set(1.0)                 # b0 fold flag

    # decoder rows: col 0 reserved for pred (handled by W_fb fold), future feats
    # in cols 1..D-1, fc-bias fold flag in col D, bias flag in col D+1
    fut_tm = jnp.transpose(future[:, :n_dec, :], (1, 0, 2))
    fut_tm = fut_tm.reshape(n_dec * B, D - 1).astype(jnp.float32)
    dec_x = jnp.zeros((n_dec * B, _DP), jnp.float32)
    dec_x = dec_x.at[:, 1:D].set(fut_tm)
    dec_x = dec_x.at[:, D].set(1.0)                     # b_fc*w_ih0[0] fold flag
    dec_x = dec_x.at[:, D + 1].set(1.0)                 # b0 fold flag

    x_all = jnp.concatenate([enc_x, dec_x], axis=0)     # ((T+F-1)*B, 8)

    # Tiny problem: no grid/tiling — everything fits in VMEM.
    # (For many independent series, add a leading "parallel" grid axis so
    #  v7x's second TensorCore is used and sublanes/MXU rows are filled.)
    out = pl.pallas_call(
        make_kernel(B, T, F, H),
        out_shape=jax.ShapeDtypeStruct((F * B, 1), jnp.float32),
        in_specs=[pl.BlockSpec(memory_space=pltpu.MemorySpace.VMEM)] * 2,
        out_specs=pl.BlockSpec(memory_space=pltpu.MemorySpace.VMEM),
    )(x_all, packed)
    return out.reshape(F, B).T                          # (B, F)


# ---------------------------------------------------------------------------
# Pure-JAX reference of the same forward (correctness check).
# ---------------------------------------------------------------------------
def reference_forward(inp, future, params):
    B, T, D = inp.shape
    F = future.shape[1]
    H = params["w_hh0"].shape[0]
    hi = jax.lax.Precision.HIGHEST

    def cell(x, h, c, w_ih, w_hh, b):
        gates = jnp.dot(x, w_ih, precision=hi) + jnp.dot(h, w_hh, precision=hi) + b
        i_g = jax.nn.sigmoid(gates[:, 0 * H:1 * H])
        f_g = jax.nn.sigmoid(gates[:, 1 * H:2 * H])
        g_g = jnp.tanh(gates[:, 2 * H:3 * H])
        o_g = jax.nn.sigmoid(gates[:, 3 * H:4 * H])
        c_new = f_g * c + i_g * g_g
        return o_g * jnp.tanh(c_new), c_new

    def step(x, state):
        h0, c0, h1, c1 = state
        h0, c0 = cell(x, h0, c0, params["w_ih0"], params["w_hh0"], params["b0"])
        h1, c1 = cell(h0, h1, c1, params["w_ih1"], params["w_hh1"], params["b1"])
        return (h0, c0, h1, c1)

    def head(h1):
        return jnp.dot(h1, params["w_fc"].T, precision=hi) + params["b_fc"]

    z = jnp.zeros((B, H), jnp.float32)
    state = (z, z, z, z)
    for t in range(T):
        state = step(inp[:, t, :], state)

    preds = [head(state[2])]
    for i in range(F - 1):
        cur = jnp.concatenate([preds[-1], future[:, i, :]], axis=1)
        state = step(cur, state)
        preds.append(head(state[2]))
    return jnp.concatenate(preds, axis=1)


# ---------------------------------------------------------------------------
# Deterministic synthetic parameter init (PyTorch-style U[-1/sqrt(H), 1/sqrt(H)]).
# ---------------------------------------------------------------------------
def init_params(key, input_size, hidden_size):
    H = hidden_size
    bound = 1.0 / jnp.sqrt(jnp.float32(H))
    ks = jax.random.split(key, 8)
    u = lambda k, shape: jax.random.uniform(k, shape, jnp.float32, -bound, bound)
    return {
        "w_ih0": u(ks[0], (input_size, 4 * H)),   # layer 0: W_ih^T
        "w_hh0": u(ks[1], (H, 4 * H)),            # layer 0: W_hh^T
        "b0":    u(ks[2], (1, 4 * H)),            # layer 0: b_ih + b_hh (combined)
        "w_ih1": u(ks[3], (H, 4 * H)),            # layer 1: W_ih^T
        "w_hh1": u(ks[4], (H, 4 * H)),            # layer 1: W_hh^T
        "b1":    u(ks[5], (1, 4 * H)),            # layer 1: combined bias
        "w_fc":  u(ks[6], (1, H)),                # fc: weight row (PyTorch layout)
        "b_fc":  u(ks[7], (1, 1)),                # fc: bias
    }


if __name__ == "__main__":
    INPUT_SIZE = 4      # LSTM input feature size (pred(1) + future feats(3))
    HIDDEN = 32
    B = 2               # batch
    T = 8               # encoder sequence length
    F = 5               # number of future steps -> output (B, F)

    root = jax.random.PRNGKey(0)
    k_p, k_i, k_f = jax.random.split(root, 3)

    params = init_params(k_p, INPUT_SIZE, HIDDEN)
    packed = pack_params(params)
    inp = jax.random.normal(k_i, (B, T, INPUT_SIZE), jnp.float32)
    future = jax.random.normal(k_f, (B, F, INPUT_SIZE - 1), jnp.float32)

    out = base_forecast_forward(inp, future, packed)
    out = jax.block_until_ready(out)

    ref = reference_forward(inp, future, params)
    assert out.shape == (B, F), out.shape
    assert jnp.allclose(out, ref, rtol=1e-3, atol=1e-3), (out, ref)

    print("KERNEL_OK")
</pallas_src>

<mosaic_0001>
module attributes {stable_mosaic.version = 11 : i64} {
  func.func @forecast_kernel(%arg0: memref<24x8xf32, #tpu.memory_space<vmem>>, %arg1: memref<144x128xf32, #tpu.memory_space<vmem>>, %arg2: memref<10x1xf32, #tpu.memory_space<vmem>>) attributes {dimension_semantics = [], scalar_prefetch = 0 : i64, scratch_operands = 0 : i64, tpu.core_type = #tpu.core_type<tc>} {
    %c0 = arith.constant 0 : index
    %c0_0 = arith.constant 0 : index
    %0 = vector.load %arg1[%c0, %c0_0] : memref<144x128xf32, #tpu.memory_space<vmem>>, vector<8x128xf32>
    %c0_1 = arith.constant 0 : index
    %c0_2 = arith.constant 0 : index
    %1 = vector.load %arg0[%c0_1, %c0_2] : memref<24x8xf32, #tpu.memory_space<vmem>>, vector<24x8xf32>
    %cst = arith.constant dense<0.000000e+00> : vector<24x128xf32>
    %2 = tpu.matmul %1, %0, %cst {dimension_numbers = #tpu.dot_dimension_numbers<[1], [0], [0], [1], [0, 0, 1, 1], [], []>} : vector<24x8xf32>, vector<8x128xf32>, vector<24x128xf32> -> vector<24x128xf32>
    %c8 = arith.constant 8 : index
    %c0_3 = arith.constant 0 : index
    %3 = vector.load %arg1[%c8, %c0_3] : memref<144x128xf32, #tpu.memory_space<vmem>>, vector<1x128xf32>
    %4 = vector.shape_cast %3 : vector<1x128xf32> to vector<1x128xf32>
    %5 = vector.broadcast %4 : vector<1x128xf32> to vector<2x128xf32>
    %c9 = arith.constant 9 : index
    %c0_4 = arith.constant 0 : index
    %6 = vector.load %arg1[%c9, %c0_4] : memref<144x128xf32, #tpu.memory_space<vmem>>, vector<1x32xf32>
    %c10 = arith.constant 10 : index
    %c0_5 = arith.constant 0 : index
    %7 = vector.load %arg1[%c10, %c0_5] : memref<144x128xf32, #tpu.memory_space<vmem>>, vector<1x1xf32>
    %c16 = arith.constant 16 : index
    %c0_6 = arith.constant 0 : index
    %8 = vector.load %arg1[%c16, %c0_6] : memref<144x128xf32, #tpu.memory_space<vmem>>, vector<32x128xf32>
    %c16_7 = arith.constant 16 : index
    %c0_8 = arith.constant 0 : index
    %9 = vector.load %arg1[%c16_7, %c0_8] : memref<144x128xf32, #tpu.memory_space<vmem>>, vector<64x128xf32>
    %c80 = arith.constant 80 : index
    %c0_9 = arith.constant 0 : index
    %10 = vector.load %arg1[%c80, %c0_9] : memref<144x128xf32, #tpu.memory_space<vmem>>, vector<64x128xf32>
    %cst_10 = arith.constant 0.000000e+00 : f32
    %11 = vector.broadcast %cst_10 : f32 to vector<2x32xf32>
    %12 = vector.extract_strided_slice %2 {offsets = [0, 0], sizes = [2, 128], strides = [1, 1]} : vector<24x128xf32> to vector<2x128xf32>
    %cst_11 = arith.constant dense<0.000000e+00> : vector<2x128xf32>
    %13 = tpu.matmul %11, %8, %cst_11 {dimension_numbers = #tpu.dot_dimension_numbers<[1], [0], [0], [1], [0, 0, 1, 1], [], []>} : vector<2x32xf32>, vector<32x128xf32>, vector<2x128xf32> -> vector<2x128xf32>
    %14 = arith.addf %12, %13 : vector<2x128xf32>
    %15 = arith.negf %14 : vector<2x128xf32>
    %16 = math.exp %15 : vector<2x128xf32>
    %cst_12 = arith.constant 1.000000e+00 : f32
    %17 = vector.broadcast %cst_12 : f32 to vector<2x128xf32>
    %18 = arith.addf %17, %16 : vector<2x128xf32>
    %19 = arith.divf %17, %18 : vector<2x128xf32>
    %20 = math.tanh %14 : vector<2x128xf32>
    %21 = vector.extract_strided_slice %19 {offsets = [0, 0], sizes = [2, 32], strides = [1, 1]} : vector<2x128xf32> to vector<2x32xf32>
    %22 = vector.extract_strided_slice %19 {offsets = [0, 32], sizes = [2, 32], strides = [1, 1]} : vector<2x128xf32> to vector<2x32xf32>
    %23 = vector.extract_strided_slice %20 {offsets = [0, 64], sizes = [2, 32], strides = [1, 1]} : vector<2x128xf32> to vector<2x32xf32>
    %24 = vector.extract_strided_slice %19 {offsets = [0, 96], sizes = [2, 32], strides = [1, 1]} : vector<2x128xf32> to vector<2x32xf32>
    %25 = arith.mulf %22, %11 : vector<2x32xf32>
    %26 = arith.mulf %21, %23 : vector<2x32xf32>
    %27 = arith.addf %25, %26 : vector<2x32xf32>
    %28 = math.tanh %27 : vector<2x32xf32>
    %29 = arith.mulf %24, %28 : vector<2x32xf32>
    %30 = tpu.concatenate %29, %11 in 1 : vector<2x32xf32>, vector<2x32xf32> -> vector<2x64xf32>
    %cst_13 = arith.constant dense<0.000000e+00> : vector<2x128xf32>
    %31 = tpu.matmul %30, %10, %cst_13 {dimension_numbers = #tpu.dot_dimension_numbers<[1], [0], [0], [1], [0, 0, 1, 1], [], []>} : vector<2x64xf32>, vector<64x128xf32>, vector<2x128xf32> -> vector<2x128xf32>
    %32 = arith.addf %31, %5 : vector<2x128xf32>
    %33 = arith.negf %32 : vector<2x128xf32>
    %34 = math.exp %33 : vector<2x128xf32>
    %cst_14 = arith.constant 1.000000e+00 : f32
    %35 = vector.broadcast %cst_14 : f32 to vector<2x128xf32>
    %36 = arith.addf %35, %34 : vector<2x128xf32>
    %37 = arith.divf %35, %36 : vector<2x128xf32>
    %38 = math.tanh %32 : vector<2x128xf32>
    %39 = vector.extract_strided_slice %37 {offsets = [0, 0], sizes = [2, 32], strides = [1, 1]} : vector<2x128xf32> to vector<2x32xf32>
    %40 = vector.extract_strided_slice %37 {offsets = [0, 32], sizes = [2, 32], strides = [1, 1]} : vector<2x128xf32> to vector<2x32xf32>
    %41 = vector.extract_strided_slice %38 {offsets = [0, 64], sizes = [2, 32], strides = [1, 1]} : vector<2x128xf32> to vector<2x32xf32>
    %42 = vector.extract_strided_slice %37 {offsets = [0, 96], sizes = [2, 32], strides = [1, 1]} : vector<2x128xf32> to vector<2x32xf32>
    %43 = arith.mulf %40, %11 : vector<2x32xf32>
    %44 = arith.mulf %39, %41 : vector<2x32xf32>
    %45 = arith.addf %43, %44 : vector<2x32xf32>
    %46 = math.tanh %45 : vector<2x32xf32>
    %47 = arith.mulf %42, %46 : vector<2x32xf32>
    %48 = vector.extract_strided_slice %2 {offsets = [2, 0], sizes = [2, 128], strides = [1, 1]} : vector<24x128xf32> to vector<2x128xf32>
    %cst_15 = arith.constant dense<0.000000e+00> : vector<2x128xf32>
    %49 = tpu.matmul %29, %8, %cst_15 {dimension_numbers = #tpu.dot_dimension_numbers<[1], [0], [0], [1], [0, 0, 1, 1], [], []>} : vector<2x32xf32>, vector<32x128xf32>, vector<2x128xf32> -> vector<2x128xf32>
    %50 = arith.addf %48, %49 : vector<2x128xf32>
    %51 = arith.negf %50 : vector<2x128xf32>
    %52 = math.exp %51 : vector<2x128xf32>
    %cst_16 = arith.constant 1.000000e+00 : f32
    %53 = vector.broadcast %cst_16 : f32 to vector<2x128xf32>
    %54 = arith.addf %53, %52 : vector<2x128xf32>
    %55 = arith.divf %53, %54 : vector<2x128xf32>
    %56 = math.tanh %50 : vector<2x128xf32>
    %57 = vector.extract_strided_slice %55 {offsets = [0, 0], sizes = [2, 32], strides = [1, 1]} : vector<2x128xf32> to vector<2x32xf32>
    %58 = vector.extract_strided_slice %55 {offsets = [0, 32], sizes = [2, 32], strides = [1, 1]} : vector<2x128xf32> to vector<2x32xf32>
    %59 = vector.extract_strided_slice %56 {offsets = [0, 64], sizes = [2, 32], strides = [1, 1]} : vector<2x128xf32> to vector<2x32xf32>
    %60 = vector.extract_strided_slice %55 {offsets = [0, 96], sizes = [2, 32], strides = [1, 1]} : vector<2x128xf32> to vector<2x32xf32>
    %61 = arith.mulf %58, %27 : vector<2x32xf32>
    %62 = arith.mulf %57, %59 : vector<2x32xf32>
    %63 = arith.addf %61, %62 : vector<2x32xf32>
    %64 = math.tanh %63 : vector<2x32xf32>
    %65 = arith.mulf %60, %64 : vector<2x32xf32>
    %66 = tpu.concatenate %65, %47 in 1 : vector<2x32xf32>, vector<2x32xf32> -> vector<2x64xf32>
    %cst_17 = arith.constant dense<0.000000e+00> : vector<2x128xf32>
    %67 = tpu.matmul %66, %10, %cst_17 {dimension_numbers = #tpu.dot_dimension_numbers<[1], [0], [0], [1], [0, 0, 1, 1], [], []>} : vector<2x64xf32>, vector<64x128xf32>, vector<2x128xf32> -> vector<2x128xf32>
    %68 = arith.addf %67, %5 : vector<2x128xf32>
    %69 = arith.negf %68 : vector<2x128xf32>
    %70 = math.exp %69 : vector<2x128xf32>
    %cst_18 = arith.constant 1.000000e+00 : f32
    %71 = vector.broadcast %cst_18 : f32 to vector<2x128xf32>
    %72 = arith.addf %71, %70 : vector<2x128xf32>
    %73 = arith.divf %71, %72 : vector<2x128xf32>
    %74 = math.tanh %68 : vector<2x128xf32>
    %75 = vector.extract_strided_slice %73 {offsets = [0, 0], sizes = [2, 32], strides = [1, 1]} : vector<2x128xf32> to vector<2x32xf32>
    %76 = vector.extract_strided_slice %73 {offsets = [0, 32], sizes = [2, 32], strides = [1, 1]} : vector<2x128xf32> to vector<2x32xf32>
    %77 = vector.extract_strided_slice %74 {offsets = [0, 64], sizes = [2, 32], strides = [1, 1]} : vector<2x128xf32> to vector<2x32xf32>
    %78 = vector.extract_strided_slice %73 {offsets = [0, 96], sizes = [2, 32], strides = [1, 1]} : vector<2x128xf32> to vector<2x32xf32>
    %79 = arith.mulf %76, %45 : vector<2x32xf32>
    %80 = arith.mulf %75, %77 : vector<2x32xf32>
    %81 = arith.addf %79, %80 : vector<2x32xf32>
    %82 = math.tanh %81 : vector<2x32xf32>
    %83 = arith.mulf %78, %82 : vector<2x32xf32>
    %84 = vector.extract_strided_slice %2 {offsets = [4, 0], sizes = [2, 128], strides = [1, 1]} : vector<24x128xf32> to vector<2x128xf32>
    %cst_19 = arith.constant dense<0.000000e+00> : vector<2x128xf32>
    %85 = tpu.matmul %65, %8, %cst_19 {dimension_numbers = #tpu.dot_dimension_numbers<[1], [0], [0], [1], [0, 0, 1, 1], [], []>} : vector<2x32xf32>, vector<32x128xf32>, vector<2x128xf32> -> vector<2x128xf32>
    %86 = arith.addf %84, %85 : vector<2x128xf32>
    %87 = arith.negf %86 : vector<2x128xf32>
    %88 = math.exp %87 : vector<2x128xf32>
    %cst_20 = arith.constant 1.000000e+00 : f32
    %89 = vector.broadcast %cst_20 : f32 to vector<2x128xf32>
    %90 = arith.addf %89, %88 : vector<2x128xf32>
    %91 = arith.divf %89, %90 : vector<2x128xf32>
    %92 = math.tanh %86 : vector<2x128xf32>
    %93 = vector.extract_strided_slice %91 {offsets = [0, 0], sizes = [2, 32], strides = [1, 1]} : vector<2x128xf32> to vector<2x32xf32>
    %94 = vector.extract_strided_slice %91 {offsets = [0, 32], sizes = [2, 32], strides = [1, 1]} : vector<2x128xf32> to vector<2x32xf32>
    %95 = vector.extract_strided_slice %92 {offsets = [0, 64], sizes = [2, 32], strides = [1, 1]} : vector<2x128xf32> to vector<2x32xf32>
    %96 = vector.extract_strided_slice %91 {offsets = [0, 96], sizes = [2, 32], strides = [1, 1]} : vector<2x128xf32> to vector<2x32xf32>
    %97 = arith.mulf %94, %63 : vector<2x32xf32>
    %98 = arith.mulf %93, %95 : vector<2x32xf32>
    %99 = arith.addf %97, %98 : vector<2x32xf32>
    %100 = math.tanh %99 : vector<2x32xf32>
    %101 = arith.mulf %96, %100 : vector<2x32xf32>
    %102 = tpu.concatenate %101, %83 in 1 : vector<2x32xf32>, vector<2x32xf32> -> vector<2x64xf32>
    %cst_21 = arith.constant dense<0.000000e+00> : vector<2x128xf32>
    %103 = tpu.matmul %102, %10, %cst_21 {dimension_numbers = #tpu.dot_dimension_numbers<[1], [0], [0], [1], [0, 0, 1, 1], [], []>} : vector<2x64xf32>, vector<64x128xf32>, vector<2x128xf32> -> vector<2x128xf32>
    %104 = arith.addf %103, %5 : vector<2x128xf32>
    %105 = arith.negf %104 : vector<2x128xf32>
    %106 = math.exp %105 : vector<2x128xf32>
    %cst_22 = arith.constant 1.000000e+00 : f32
    %107 = vector.broadcast %cst_22 : f32 to vector<2x128xf32>
    %108 = arith.addf %107, %106 : vector<2x128xf32>
    %109 = arith.divf %107, %108 : vector<2x128xf32>
    %110 = math.tanh %104 : vector<2x128xf32>
    %111 = vector.extract_strided_slice %109 {offsets = [0, 0], sizes = [2, 32], strides = [1, 1]} : vector<2x128xf32> to vector<2x32xf32>
    %112 = vector.extract_strided_slice %109 {offsets = [0, 32], sizes = [2, 32], strides = [1, 1]} : vector<2x128xf32> to vector<2x32xf32>
    %113 = vector.extract_strided_slice %110 {offsets = [0, 64], sizes = [2, 32], strides = [1, 1]} : vector<2x128xf32> to vector<2x32xf32>
    %114 = vector.extract_strided_slice %109 {offsets = [0, 96], sizes = [2, 32], strides = [1, 1]} : vector<2x128xf32> to vector<2x32xf32>
    %115 = arith.mulf %112, %81 : vector<2x32xf32>
    %116 = arith.mulf %111, %113 : vector<2x32xf32>
    %117 = arith.addf %115, %116 : vector<2x32xf32>
    %118 = math.tanh %117 : vector<2x32xf32>
    %119 = arith.mulf %114, %118 : vector<2x32xf32>
    %120 = vector.extract_strided_slice %2 {offsets = [6, 0], sizes = [2, 128], strides = [1, 1]} : vector<24x128xf32> to vector<2x128xf32>
    %cst_23 = arith.constant dense<0.000000e+00> : vector<2x128xf32>
    %121 = tpu.matmul %101, %8, %cst_23 {dimension_numbers = #tpu.dot_dimension_numbers<[1], [0], [0], [1], [0, 0, 1, 1], [], []>} : vector<2x32xf32>, vector<32x128xf32>, vector<2x128xf32> -> vector<2x128xf32>
    %122 = arith.addf %120, %121 : vector<2x128xf32>
    %123 = arith.negf %122 : vector<2x128xf32>
    %124 = math.exp %123 : vector<2x128xf32>
    %cst_24 = arith.constant 1.000000e+00 : f32
    %125 = vector.broadcast %cst_24 : f32 to vector<2x128xf32>
    %126 = arith.addf %125, %124 : vector<2x128xf32>
    %127 = arith.divf %125, %126 : vector<2x128xf32>
    %128 = math.tanh %122 : vector<2x128xf32>
    %129 = vector.extract_strided_slice %127 {offsets = [0, 0], sizes = [2, 32], strides = [1, 1]} : vector<2x128xf32> to vector<2x32xf32>
    %130 = vector.extract_strided_slice %127 {offsets = [0, 32], sizes = [2, 32], strides = [1, 1]} : vector<2x128xf32> to vector<2x32xf32>
    %131 = vector.extract_strided_slice %128 {offsets = [0, 64], sizes = [2, 32], strides = [1, 1]} : vector<2x128xf32> to vector<2x32xf32>
    %132 = vector.extract_strided_slice %127 {offsets = [0, 96], sizes = [2, 32], strides = [1, 1]} : vector<2x128xf32> to vector<2x32xf32>
    %133 = arith.mulf %130, %99 : vector<2x32xf32>
    %134 = arith.mulf %129, %131 : vector<2x32xf32>
    %135 = arith.addf %133, %134 : vector<2x32xf32>
    %136 = math.tanh %135 : vector<2x32xf32>
    %137 = arith.mulf %132, %136 : vector<2x32xf32>
    %138 = tpu.concatenate %137, %119 in 1 : vector<2x32xf32>, vector<2x32xf32> -> vector<2x64xf32>
    %cst_25 = arith.constant dense<0.000000e+00> : vector<2x128xf32>
    %139 = tpu.matmul %138, %10, %cst_25 {dimension_numbers = #tpu.dot_dimension_numbers<[1], [0], [0], [1], [0, 0, 1, 1], [], []>} : vector<2x64xf32>, vector<64x128xf32>, vector<2x128xf32> -> vector<2x128xf32>
    %140 = arith.addf %139, %5 : vector<2x128xf32>
    %141 = arith.negf %140 : vector<2x128xf32>
    %142 = math.exp %141 : vector<2x128xf32>
    %cst_26 = arith.constant 1.000000e+00 : f32
    %143 = vector.broadcast %cst_26 : f32 to vector<2x128xf32>
    %144 = arith.addf %143, %142 : vector<2x128xf32>
    %145 = arith.divf %143, %144 : vector<2x128xf32>
    %146 = math.tanh %140 : vector<2x128xf32>
    %147 = vector.extract_strided_slice %145 {offsets = [0, 0], sizes = [2, 32], strides = [1, 1]} : vector<2x128xf32> to vector<2x32xf32>
    %148 = vector.extract_strided_slice %145 {offsets = [0, 32], sizes = [2, 32], strides = [1, 1]} : vector<2x128xf32> to vector<2x32xf32>
    %149 = vector.extract_strided_slice %146 {offsets = [0, 64], sizes = [2, 32], strides = [1, 1]} : vector<2x128xf32> to vector<2x32xf32>
    %150 = vector.extract_strided_slice %145 {offsets = [0, 96], sizes = [2, 32], strides = [1, 1]} : vector<2x128xf32> to vector<2x32xf32>
    %151 = arith.mulf %148, %117 : vector<2x32xf32>
    %152 = arith.mulf %147, %149 : vector<2x32xf32>
    %153 = arith.addf %151, %152 : vector<2x32xf32>
    %154 = math.tanh %153 : vector<2x32xf32>
    %155 = arith.mulf %150, %154 : vector<2x32xf32>
    %156 = vector.extract_strided_slice %2 {offsets = [8, 0], sizes = [2, 128], strides = [1, 1]} : vector<24x128xf32> to vector<2x128xf32>
    %cst_27 = arith.constant dense<0.000000e+00> : vector<2x128xf32>
    %157 = tpu.matmul %137, %8, %cst_27 {dimension_numbers = #tpu.dot_dimension_numbers<[1], [0], [0], [1], [0, 0, 1, 1], [], []>} : vector<2x32xf32>, vector<32x128xf32>, vector<2x128xf32> -> vector<2x128xf32>
    %158 = arith.addf %156, %157 : vector<2x128xf32>
    %159 = arith.negf %158 : vector<2x128xf32>
    %160 = math.exp %159 : vector<2x128xf32>
    %cst_28 = arith.constant 1.000000e+00 : f32
    %161 = vector.broadcast %cst_28 : f32 to vector<2x128xf32>
    %162 = arith.addf %161, %160 : vector<2x128xf32>
    %163 = arith.divf %161, %162 : vector<2x128xf32>
    %164 = math.tanh %158 : vector<2x128xf32>
    %165 = vector.extract_strided_slice %163 {offsets = [0, 0], sizes = [2, 32], strides = [1, 1]} : vector<2x128xf32> to vector<2x32xf32>
    %166 = vector.extract_strided_slice %163 {offsets = [0, 32], sizes = [2, 32], strides = [1, 1]} : vector<2x128xf32> to vector<2x32xf32>
    %167 = vector.extract_strided_slice %164 {offsets = [0, 64], sizes = [2, 32], strides = [1, 1]} : vector<2x128xf32> to vector<2x32xf32>
    %168 = vector.extract_strided_slice %163 {offsets = [0, 96], sizes = [2, 32], strides = [1, 1]} : vector<2x128xf32> to vector<2x32xf32>
    %169 = arith.mulf %166, %135 : vector<2x32xf32>
    %170 = arith.mulf %165, %167 : vector<2x32xf32>
    %171 = arith.addf %169, %170 : vector<2x32xf32>
    %172 = math.tanh %171 : vector<2x32xf32>
    %173 = arith.mulf %168, %172 : vector<2x32xf32>
    %174 = tpu.concatenate %173, %155 in 1 : vector<2x32xf32>, vector<2x32xf32> -> vector<2x64xf32>
    %cst_29 = arith.constant dense<0.000000e+00> : vector<2x128xf32>
    %175 = tpu.matmul %174, %10, %cst_29 {dimension_numbers = #tpu.dot_dimension_numbers<[1], [0], [0], [1], [0, 0, 1, 1], [], []>} : vector<2x64xf32>, vector<64x128xf32>, vector<2x128xf32> -> vector<2x128xf32>
    %176 = arith.addf %175, %5 : vector<2x128xf32>
    %177 = arith.negf %176 : vector<2x128xf32>
    %178 = math.exp %177 : vector<2x128xf32>
    %cst_30 = arith.constant 1.000000e+00 : f32
    %179 = vector.broadcast %cst_30 : f32 to vector<2x128xf32>
    %180 = arith.addf %179, %178 : vector<2x128xf32>
    %181 = arith.divf %179, %180 : vector<2x128xf32>
    %182 = math.tanh %176 : vector<2x128xf32>
    %183 = vector.extract_strided_slice %181 {offsets = [0, 0], sizes = [2, 32], strides = [1, 1]} : vector<2x128xf32> to vector<2x32xf32>
    %184 = vector.extract_strided_slice %181 {offsets = [0, 32], sizes = [2, 32], strides = [1, 1]} : vector<2x128xf32> to vector<2x32xf32>
    %185 = vector.extract_strided_slice %182 {offsets = [0, 64], sizes = [2, 32], strides = [1, 1]} : vector<2x128xf32> to vector<2x32xf32>
    %186 = vector.extract_strided_slice %181 {offsets = [0, 96], sizes = [2, 32], strides = [1, 1]} : vector<2x128xf32> to vector<2x32xf32>
    %187 = arith.mulf %184, %153 : vector<2x32xf32>
    %188 = arith.mulf %183, %185 : vector<2x32xf32>
    %189 = arith.addf %187, %188 : vector<2x32xf32>
    %190 = math.tanh %189 : vector<2x32xf32>
    %191 = arith.mulf %186, %190 : vector<2x32xf32>
    %192 = vector.extract_strided_slice %2 {offsets = [10, 0], sizes = [2, 128], strides = [1, 1]} : vector<24x128xf32> to vector<2x128xf32>
    %cst_31 = arith.constant dense<0.000000e+00> : vector<2x128xf32>
    %193 = tpu.matmul %173, %8, %cst_31 {dimension_numbers = #tpu.dot_dimension_numbers<[1], [0], [0], [1], [0, 0, 1, 1], [], []>} : vector<2x32xf32>, vector<32x128xf32>, vector<2x128xf32> -> vector<2x128xf32>
    %194 = arith.addf %192, %193 : vector<2x128xf32>
    %195 = arith.negf %194 : vector<2x128xf32>
    %196 = math.exp %195 : vector<2x128xf32>
    %cst_32 = arith.constant 1.000000e+00 : f32
    %197 = vector.broadcast %cst_32 : f32 to vector<2x128xf32>
    %198 = arith.addf %197, %196 : vector<2x128xf32>
    %199 = arith.divf %197, %198 : vector<2x128xf32>
    %200 = math.tanh %194 : vector<2x128xf32>
    %201 = vector.extract_strided_slice %199 {offsets = [0, 0], sizes = [2, 32], strides = [1, 1]} : vector<2x128xf32> to vector<2x32xf32>
    %202 = vector.extract_strided_slice %199 {offsets = [0, 32], sizes = [2, 32], strides = [1, 1]} : vector<2x128xf32> to vector<2x32xf32>
    %203 = vector.extract_strided_slice %200 {offsets = [0, 64], sizes = [2, 32], strides = [1, 1]} : vector<2x128xf32> to vector<2x32xf32>
    %204 = vector.extract_strided_slice %199 {offsets = [0, 96], sizes = [2, 32], strides = [1, 1]} : vector<2x128xf32> to vector<2x32xf32>
    %205 = arith.mulf %202, %171 : vector<2x32xf32>
    %206 = arith.mulf %201, %203 : vector<2x32xf32>
    %207 = arith.addf %205, %206 : vector<2x32xf32>
    %208 = math.tanh %207 : vector<2x32xf32>
    %209 = arith.mulf %204, %208 : vector<2x32xf32>
    %210 = tpu.concatenate %209, %191 in 1 : vector<2x32xf32>, vector<2x32xf32> -> vector<2x64xf32>
    %cst_33 = arith.constant dense<0.000000e+00> : vector<2x128xf32>
    %211 = tpu.matmul %210, %10, %cst_33 {dimension_numbers = #tpu.dot_dimension_numbers<[1], [0], [0], [1], [0, 0, 1, 1], [], []>} : vector<2x64xf32>, vector<64x128xf32>, vector<2x128xf32> -> vector<2x128xf32>
    %212 = arith.addf %211, %5 : vector<2x128xf32>
    %213 = arith.negf %212 : vector<2x128xf32>
    %214 = math.exp %213 : vector<2x128xf32>
    %cst_34 = arith.constant 1.000000e+00 : f32
    %215 = vector.broadcast %cst_34 : f32 to vector<2x128xf32>
    %216 = arith.addf %215, %214 : vector<2x128xf32>
    %217 = arith.divf %215, %216 : vector<2x128xf32>
    %218 = math.tanh %212 : vector<2x128xf32>
    %219 = vector.extract_strided_slice %217 {offsets = [0, 0], sizes = [2, 32], strides = [1, 1]} : vector<2x128xf32> to vector<2x32xf32>
    %220 = vector.extract_strided_slice %217 {offsets = [0, 32], sizes = [2, 32], strides = [1, 1]} : vector<2x128xf32> to vector<2x32xf32>
    %221 = vector.extract_strided_slice %218 {offsets = [0, 64], sizes = [2, 32], strides = [1, 1]} : vector<2x128xf32> to vector<2x32xf32>
    %222 = vector.extract_strided_slice %217 {offsets = [0, 96], sizes = [2, 32], strides = [1, 1]} : vector<2x128xf32> to vector<2x32xf32>
    %223 = arith.mulf %220, %189 : vector<2x32xf32>
    %224 = arith.mulf %219, %221 : vector<2x32xf32>
    %225 = arith.addf %223, %224 : vector<2x32xf32>
    %226 = math.tanh %225 : vector<2x32xf32>
    %227 = arith.mulf %222, %226 : vector<2x32xf32>
    %228 = vector.extract_strided_slice %2 {offsets = [12, 0], sizes = [2, 128], strides = [1, 1]} : vector<24x128xf32> to vector<2x128xf32>
    %cst_35 = arith.constant dense<0.000000e+00> : vector<2x128xf32>
    %229 = tpu.matmul %209, %8, %cst_35 {dimension_numbers = #tpu.dot_dimension_numbers<[1], [0], [0], [1], [0, 0, 1, 1], [], []>} : vector<2x32xf32>, vector<32x128xf32>, vector<2x128xf32> -> vector<2x128xf32>
    %230 = arith.addf %228, %229 : vector<2x128xf32>
    %231 = arith.negf %230 : vector<2x128xf32>
    %232 = math.exp %231 : vector<2x128xf32>
    %cst_36 = arith.constant 1.000000e+00 : f32
    %233 = vector.broadcast %cst_36 : f32 to vector<2x128xf32>
    %234 = arith.addf %233, %232 : vector<2x128xf32>
    %235 = arith.divf %233, %234 : vector<2x128xf32>
    %236 = math.tanh %230 : vector<2x128xf32>
    %237 = vector.extract_strided_slice %235 {offsets = [0, 0], sizes = [2, 32], strides = [1, 1]} : vector<2x128xf32> to vector<2x32xf32>
    %238 = vector.extract_strided_slice %235 {offsets = [0, 32], sizes = [2, 32], strides = [1, 1]} : vector<2x128xf32> to vector<2x32xf32>
    %239 = vector.extract_strided_slice %236 {offsets = [0, 64], sizes = [2, 32], strides = [1, 1]} : vector<2x128xf32> to vector<2x32xf32>
    %240 = vector.extract_strided_slice %235 {offsets = [0, 96], sizes = [2, 32], strides = [1, 1]} : vector<2x128xf32> to vector<2x32xf32>
    %241 = arith.mulf %238, %207 : vector<2x32xf32>
    %242 = arith.mulf %237, %239 : vector<2x32xf32>
    %243 = arith.addf %241, %242 : vector<2x32xf32>
    %244 = math.tanh %243 : vector<2x32xf32>
    %245 = arith.mulf %240, %244 : vector<2x32xf32>
    %246 = tpu.concatenate %245, %227 in 1 : vector<2x32xf32>, vector<2x32xf32> -> vector<2x64xf32>
    %cst_37 = arith.constant dense<0.000000e+00> : vector<2x128xf32>
    %247 = tpu.matmul %246, %10, %cst_37 {dimension_numbers = #tpu.dot_dimension_numbers<[1], [0], [0], [1], [0, 0, 1, 1], [], []>} : vector<2x64xf32>, vector<64x128xf32>, vector<2x128xf32> -> vector<2x128xf32>
    %248 = arith.addf %247, %5 : vector<2x128xf32>
    %249 = arith.negf %248 : vector<2x128xf32>
    %250 = math.exp %249 : vector<2x128xf32>
    %cst_38 = arith.constant 1.000000e+00 : f32
    %251 = vector.broadcast %cst_38 : f32 to vector<2x128xf32>
    %252 = arith.addf %251, %250 : vector<2x128xf32>
    %253 = arith.divf %251, %252 : vector<2x128xf32>
    %254 = math.tanh %248 : vector<2x128xf32>
    %255 = vector.extract_strided_slice %253 {offsets = [0, 0], sizes = [2, 32], strides = [1, 1]} : vector<2x128xf32> to vector<2x32xf32>
    %256 = vector.extract_strided_slice %253 {offsets = [0, 32], sizes = [2, 32], strides = [1, 1]} : vector<2x128xf32> to vector<2x32xf32>
    %257 = vector.extract_strided_slice %254 {offsets = [0, 64], sizes = [2, 32], strides = [1, 1]} : vector<2x128xf32> to vector<2x32xf32>
    %258 = vector.extract_strided_slice %253 {offsets = [0, 96], sizes = [2, 32], strides = [1, 1]} : vector<2x128xf32> to vector<2x32xf32>
    %259 = arith.mulf %256, %225 : vector<2x32xf32>
    %260 = arith.mulf %255, %257 : vector<2x32xf32>
    %261 = arith.addf %259, %260 : vector<2x32xf32>
    %262 = math.tanh %261 : vector<2x32xf32>
    %263 = arith.mulf %258, %262 : vector<2x32xf32>
    %264 = vector.extract_strided_slice %2 {offsets = [14, 0], sizes = [2, 128], strides = [1, 1]} : vector<24x128xf32> to vector<2x128xf32>
    %cst_39 = arith.constant dense<0.000000e+00> : vector<2x128xf32>
    %265 = tpu.matmul %245, %8, %cst_39 {dimension_numbers = #tpu.dot_dimension_numbers<[1], [0], [0], [1], [0, 0, 1, 1], [], []>} : vector<2x32xf32>, vector<32x128xf32>, vector<2x128xf32> -> vector<2x128xf32>
    %266 = arith.addf %264, %265 : vector<2x128xf32>
    %267 = arith.negf %266 : vector<2x128xf32>
    %268 = math.exp %267 : vector<2x128xf32>
    %cst_40 = arith.constant 1.000000e+00 : f32
    %269 = vector.broadcast %cst_40 : f32 to vector<2x128xf32>
    %270 = arith.addf %269, %268 : vector<2x128xf32>
    %271 = arith.divf %269, %270 : vector<2x128xf32>
    %272 = math.tanh %266 : vector<2x128xf32>
    %273 = vector.extract_strided_slice %271 {offsets = [0, 0], sizes = [2, 32], strides = [1, 1]} : vector<2x128xf32> to vector<2x32xf32>
    %274 = vector.extract_strided_slice %271 {offsets = [0, 32], sizes = [2, 32], strides = [1, 1]} : vector<2x128xf32> to vector<2x32xf32>
    %275 = vector.extract_strided_slice %272 {offsets = [0, 64], sizes = [2, 32], strides = [1, 1]} : vector<2x128xf32> to vector<2x32xf32>
    %276 = vector.extract_strided_slice %271 {offsets = [0, 96], sizes = [2, 32], strides = [1, 1]} : vector<2x128xf32> to vector<2x32xf32>
    %277 = arith.mulf %274, %243 : vector<2x32xf32>
    %278 = arith.mulf %273, %275 : vector<2x32xf32>
    %279 = arith.addf %277, %278 : vector<2x32xf32>
    %280 = math.tanh %279 : vector<2x32xf32>
    %281 = arith.mulf %276, %280 : vector<2x32xf32>
    %282 = tpu.concatenate %281, %263 in 1 : vector<2x32xf32>, vector<2x32xf32> -> vector<2x64xf32>
    %cst_41 = arith.constant dense<0.000000e+00> : vector<2x128xf32>
    %283 = tpu.matmul %282, %10, %cst_41 {dimension_numbers = #tpu.dot_dimension_numbers<[1], [0], [0], [1], [0, 0, 1, 1], [], []>} : vector<2x64xf32>, vector<64x128xf32>, vector<2x128xf32> -> vector<2x128xf32>
    %284 = arith.addf %283, %5 : vector<2x128xf32>
    %285 = arith.negf %284 : vector<2x128xf32>
    %286 = math.exp %285 : vector<2x128xf32>
    %cst_42 = arith.constant 1.000000e+00 : f32
    %287 = vector.broadcast %cst_42 : f32 to vector<2x128xf32>
    %288 = arith.addf %287, %286 : vector<2x128xf32>
    %289 = arith.divf %287, %288 : vector<2x128xf32>
    %290 = math.tanh %284 : vector<2x128xf32>
    %291 = vector.extract_strided_slice %289 {offsets = [0, 0], sizes = [2, 32], strides = [1, 1]} : vector<2x128xf32> to vector<2x32xf32>
    %292 = vector.extract_strided_slice %289 {offsets = [0, 32], sizes = [2, 32], strides = [1, 1]} : vector<2x128xf32> to vector<2x32xf32>
    %293 = vector.extract_strided_slice %290 {offsets = [0, 64], sizes = [2, 32], strides = [1, 1]} : vector<2x128xf32> to vector<2x32xf32>
    %294 = vector.extract_strided_slice %289 {offsets = [0, 96], sizes = [2, 32], strides = [1, 1]} : vector<2x128xf32> to vector<2x32xf32>
    %295 = arith.mulf %292, %261 : vector<2x32xf32>
    %296 = arith.mulf %291, %293 : vector<2x32xf32>
    %297 = arith.addf %295, %296 : vector<2x32xf32>
    %298 = math.tanh %297 : vector<2x32xf32>
    %299 = arith.mulf %294, %298 : vector<2x32xf32>
    %300 = tpu.concatenate %281, %299 in 1 : vector<2x32xf32>, vector<2x32xf32> -> vector<2x64xf32>
    %301 = vector.extract_strided_slice %2 {offsets = [16, 0], sizes = [2, 128], strides = [1, 1]} : vector<24x128xf32> to vector<2x128xf32>
    %cst_43 = arith.constant dense<0.000000e+00> : vector<2x128xf32>
    %302 = tpu.matmul %300, %9, %cst_43 {dimension_numbers = #tpu.dot_dimension_numbers<[1], [0], [0], [1], [0, 0, 1, 1], [], []>} : vector<2x64xf32>, vector<64x128xf32>, vector<2x128xf32> -> vector<2x128xf32>
    %303 = arith.addf %301, %302 : vector<2x128xf32>
    %304 = arith.negf %303 : vector<2x128xf32>
    %305 = math.exp %304 : vector<2x128xf32>
    %cst_44 = arith.constant 1.000000e+00 : f32
    %306 = vector.broadcast %cst_44 : f32 to vector<2x128xf32>
    %307 = arith.addf %306, %305 : vector<2x128xf32>
    %308 = arith.divf %306, %307 : vector<2x128xf32>
    %309 = math.tanh %303 : vector<2x128xf32>
    %310 = vector.extract_strided_slice %308 {offsets = [0, 0], sizes = [2, 32], strides = [1, 1]} : vector<2x128xf32> to vector<2x32xf32>
    %311 = vector.extract_strided_slice %308 {offsets = [0, 32], sizes = [2, 32], strides = [1, 1]} : vector<2x128xf32> to vector<2x32xf32>
    %312 = vector.extract_strided_slice %309 {offsets = [0, 64], sizes = [2, 32], strides = [1, 1]} : vector<2x128xf32> to vector<2x32xf32>
    %313 = vector.extract_strided_slice %308 {offsets = [0, 96], sizes = [2, 32], strides = [1, 1]} : vector<2x128xf32> to vector<2x32xf32>
    %314 = arith.mulf %311, %279 : vector<2x32xf32>
    %315 = arith.mulf %310, %312 : vector<2x32xf32>
    %316 = arith.addf %314, %315 : vector<2x32xf32>
    %317 = math.tanh %316 : vector<2x32xf32>
    %318 = arith.mulf %313, %317 : vector<2x32xf32>
    %319 = tpu.concatenate %318, %299 in 1 : vector<2x32xf32>, vector<2x32xf32> -> vector<2x64xf32>
    %cst_45 = arith.constant dense<0.000000e+00> : vector<2x128xf32>
    %320 = tpu.matmul %319, %10, %cst_45 {dimension_numbers = #tpu.dot_dimension_numbers<[1], [0], [0], [1], [0, 0, 1, 1], [], []>} : vector<2x64xf32>, vector<64x128xf32>, vector<2x128xf32> -> vector<2x128xf32>
    %321 = arith.addf %320, %5 : vector<2x128xf32>
    %322 = arith.negf %321 : vector<2x128xf32>
    %323 = math.exp %322 : vector<2x128xf32>
    %cst_46 = arith.constant 1.000000e+00 : f32
    %324 = vector.broadcast %cst_46 : f32 to vector<2x128xf32>
    %325 = arith.addf %324, %323 : vector<2x128xf32>
    %326 = arith.divf %324, %325 : vector<2x128xf32>
    %327 = math.tanh %321 : vector<2x128xf32>
    %328 = vector.extract_strided_slice %326 {offsets = [0, 0], sizes = [2, 32], strides = [1, 1]} : vector<2x128xf32> to vector<2x32xf32>
    %329 = vector.extract_strided_slice %326 {offsets = [0, 32], sizes = [2, 32], strides = [1, 1]} : vector<2x128xf32> to vector<2x32xf32>
    %330 = vector.extract_strided_slice %327 {offsets = [0, 64], sizes = [2, 32], strides = [1, 1]} : vector<2x128xf32> to vector<2x32xf32>
    %331 = vector.extract_strided_slice %326 {offsets = [0, 96], sizes = [2, 32], strides = [1, 1]} : vector<2x128xf32> to vector<2x32xf32>
    %332 = arith.mulf %329, %297 : vector<2x32xf32>
    %333 = arith.mulf %328, %330 : vector<2x32xf32>
    %334 = arith.addf %332, %333 : vector<2x32xf32>
    %335 = math.tanh %334 : vector<2x32xf32>
    %336 = arith.mulf %331, %335 : vector<2x32xf32>
    %337 = tpu.concatenate %318, %336 in 1 : vector<2x32xf32>, vector<2x32xf32> -> vector<2x64xf32>
    %338 = vector.extract_strided_slice %2 {offsets = [18, 0], sizes = [2, 128], strides = [1, 1]} : vector<24x128xf32> to vector<2x128xf32>
    %cst_47 = arith.constant dense<0.000000e+00> : vector<2x128xf32>
    %339 = tpu.matmul %337, %9, %cst_47 {dimension_numbers = #tpu.dot_dimension_numbers<[1], [0], [0], [1], [0, 0, 1, 1], [], []>} : vector<2x64xf32>, vector<64x128xf32>, vector<2x128xf32> -> vector<2x128xf32>
    %340 = arith.addf %338, %339 : vector<2x128xf32>
    %341 = arith.negf %340 : vector<2x128xf32>
    %342 = math.exp %341 : vector<2x128xf32>
    %cst_48 = arith.constant 1.000000e+00 : f32
    %343 = vector.broadcast %cst_48 : f32 to vector<2x128xf32>
    %344 = arith.addf %343, %342 : vector<2x128xf32>
    %345 = arith.divf %343, %344 : vector<2x128xf32>
    %346 = math.tanh %340 : vector<2x128xf32>
    %347 = vector.extract_strided_slice %345 {offsets = [0, 0], sizes = [2, 32], strides = [1, 1]} : vector<2x128xf32> to vector<2x32xf32>
    %348 = vector.extract_strided_slice %345 {offsets = [0, 32], sizes = [2, 32], strides = [1, 1]} : vector<2x128xf32> to vector<2x32xf32>
    %349 = vector.extract_strided_slice %346 {offsets = [0, 64], sizes = [2, 32], strides = [1, 1]} : vector<2x128xf32> to vector<2x32xf32>
    %350 = vector.extract_strided_slice %345 {offsets = [0, 96], sizes = [2, 32], strides = [1, 1]} : vector<2x128xf32> to vector<2x32xf32>
    %351 = arith.mulf %348, %316 : vector<2x32xf32>
    %352 = arith.mulf %347, %349 : vector<2x32xf32>
    %353 = arith.addf %351, %352 : vector<2x32xf32>
    %354 = math.tanh %353 : vector<2x32xf32>
    %355 = arith.mulf %350, %354 : vector<2x32xf32>
    %356 = tpu.concatenate %355, %336 in 1 : vector<2x32xf32>, vector<2x32xf32> -> vector<2x64xf32>
    %cst_49 = arith.constant dense<0.000000e+00> : vector<2x128xf32>
    %357 = tpu.matmul %356, %10, %cst_49 {dimension_numbers = #tpu.dot_dimension_numbers<[1], [0], [0], [1], [0, 0, 1, 1], [], []>} : vector<2x64xf32>, vector<64x128xf32>, vector<2x128xf32> -> vector<2x128xf32>
    %358 = arith.addf %357, %5 : vector<2x128xf32>
    %359 = arith.negf %358 : vector<2x128xf32>
    %360 = math.exp %359 : vector<2x128xf32>
    %cst_50 = arith.constant 1.000000e+00 : f32
    %361 = vector.broadcast %cst_50 : f32 to vector<2x128xf32>
    %362 = arith.addf %361, %360 : vector<2x128xf32>
    %363 = arith.divf %361, %362 : vector<2x128xf32>
    %364 = math.tanh %358 : vector<2x128xf32>
    %365 = vector.extract_strided_slice %363 {offsets = [0, 0], sizes = [2, 32], strides = [1, 1]} : vector<2x128xf32> to vector<2x32xf32>
    %366 = vector.extract_strided_slice %363 {offsets = [0, 32], sizes = [2, 32], strides = [1, 1]} : vector<2x128xf32> to vector<2x32xf32>
    %367 = vector.extract_strided_slice %364 {offsets = [0, 64], sizes = [2, 32], strides = [1, 1]} : vector<2x128xf32> to vector<2x32xf32>
    %368 = vector.extract_strided_slice %363 {offsets = [0, 96], sizes = [2, 32], strides = [1, 1]} : vector<2x128xf32> to vector<2x32xf32>
    %369 = arith.mulf %366, %334 : vector<2x32xf32>
    %370 = arith.mulf %365, %367 : vector<2x32xf32>
    %371 = arith.addf %369, %370 : vector<2x32xf32>
    %372 = math.tanh %371 : vector<2x32xf32>
    %373 = arith.mulf %368, %372 : vector<2x32xf32>
    %374 = tpu.concatenate %355, %373 in 1 : vector<2x32xf32>, vector<2x32xf32> -> vector<2x64xf32>
    %375 = vector.extract_strided_slice %2 {offsets = [20, 0], sizes = [2, 128], strides = [1, 1]} : vector<24x128xf32> to vector<2x128xf32>
    %cst_51 = arith.constant dense<0.000000e+00> : vector<2x128xf32>
    %376 = tpu.matmul %374, %9, %cst_51 {dimension_numbers = #tpu.dot_dimension_numbers<[1], [0], [0], [1], [0, 0, 1, 1], [], []>} : vector<2x64xf32>, vector<64x128xf32>, vector<2x128xf32> -> vector<2x128xf32>
    %377 = arith.addf %375, %376 : vector<2x128xf32>
    %378 = arith.negf %377 : vector<2x128xf32>
    %379 = math.exp %378 : vector<2x128xf32>
    %cst_52 = arith.constant 1.000000e+00 : f32
    %380 = vector.broadcast %cst_52 : f32 to vector<2x128xf32>
    %381 = arith.addf %380, %379 : vector<2x128xf32>
    %382 = arith.divf %380, %381 : vector<2x128xf32>
    %383 = math.tanh %377 : vector<2x128xf32>
    %384 = vector.extract_strided_slice %382 {offsets = [0, 0], sizes = [2, 32], strides = [1, 1]} : vector<2x128xf32> to vector<2x32xf32>
    %385 = vector.extract_strided_slice %382 {offsets = [0, 32], sizes = [2, 32], strides = [1, 1]} : vector<2x128xf32> to vector<2x32xf32>
    %386 = vector.extract_strided_slice %383 {offsets = [0, 64], sizes = [2, 32], strides = [1, 1]} : vector<2x128xf32> to vector<2x32xf32>
    %387 = vector.extract_strided_slice %382 {offsets = [0, 96], sizes = [2, 32], strides = [1, 1]} : vector<2x128xf32> to vector<2x32xf32>
    %388 = arith.mulf %385, %353 : vector<2x32xf32>
    %389 = arith.mulf %384, %386 : vector<2x32xf32>
    %390 = arith.addf %388, %389 : vector<2x32xf32>
    %391 = math.tanh %390 : vector<2x32xf32>
    %392 = arith.mulf %387, %391 : vector<2x32xf32>
    %393 = tpu.concatenate %392, %373 in 1 : vector<2x32xf32>, vector<2x32xf32> -> vector<2x64xf32>
    %cst_53 = arith.constant dense<0.000000e+00> : vector<2x128xf32>
    %394 = tpu.matmul %393, %10, %cst_53 {dimension_numbers = #tpu.dot_dimension_numbers<[1], [0], [0], [1], [0, 0, 1, 1], [], []>} : vector<2x64xf32>, vector<64x128xf32>, vector<2x128xf32> -> vector<2x128xf32>
    %395 = arith.addf %394, %5 : vector<2x128xf32>
    %396 = arith.negf %395 : vector<2x128xf32>
    %397 = math.exp %396 : vector<2x128xf32>
    %cst_54 = arith.constant 1.000000e+00 : f32
    %398 = vector.broadcast %cst_54 : f32 to vector<2x128xf32>
    %399 = arith.addf %398, %397 : vector<2x128xf32>
    %400 = arith.divf %398, %399 : vector<2x128xf32>
    %401 = math.tanh %395 : vector<2x128xf32>
    %402 = vector.extract_strided_slice %400 {offsets = [0, 0], sizes = [2, 32], strides = [1, 1]} : vector<2x128xf32> to vector<2x32xf32>
    %403 = vector.extract_strided_slice %400 {offsets = [0, 32], sizes = [2, 32], strides = [1, 1]} : vector<2x128xf32> to vector<2x32xf32>
    %404 = vector.extract_strided_slice %401 {offsets = [0, 64], sizes = [2, 32], strides = [1, 1]} : vector<2x128xf32> to vector<2x32xf32>
    %405 = vector.extract_strided_slice %400 {offsets = [0, 96], sizes = [2, 32], strides = [1, 1]} : vector<2x128xf32> to vector<2x32xf32>
    %406 = arith.mulf %403, %371 : vector<2x32xf32>
    %407 = arith.mulf %402, %404 : vector<2x32xf32>
    %408 = arith.addf %406, %407 : vector<2x32xf32>
    %409 = math.tanh %408 : vector<2x32xf32>
    %410 = arith.mulf %405, %409 : vector<2x32xf32>
    %411 = tpu.concatenate %392, %410 in 1 : vector<2x32xf32>, vector<2x32xf32> -> vector<2x64xf32>
    %412 = vector.extract_strided_slice %2 {offsets = [22, 0], sizes = [2, 128], strides = [1, 1]} : vector<24x128xf32> to vector<2x128xf32>
    %cst_55 = arith.constant dense<0.000000e+00> : vector<2x128xf32>
    %413 = tpu.matmul %411, %9, %cst_55 {dimension_numbers = #tpu.dot_dimension_numbers<[1], [0], [0], [1], [0, 0, 1, 1], [], []>} : vector<2x64xf32>, vector<64x128xf32>, vector<2x128xf32> -> vector<2x128xf32>
    %414 = arith.addf %412, %413 : vector<2x128xf32>
    %415 = arith.negf %414 : vector<2x128xf32>
    %416 = math.exp %415 : vector<2x128xf32>
    %cst_56 = arith.constant 1.000000e+00 : f32
    %417 = vector.broadcast %cst_56 : f32 to vector<2x128xf32>
    %418 = arith.addf %417, %416 : vector<2x128xf32>
    %419 = arith.divf %417, %418 : vector<2x128xf32>
    %420 = math.tanh %414 : vector<2x128xf32>
    %421 = vector.extract_strided_slice %419 {offsets = [0, 0], sizes = [2, 32], strides = [1, 1]} : vector<2x128xf32> to vector<2x32xf32>
    %422 = vector.extract_strided_slice %419 {offsets = [0, 32], sizes = [2, 32], strides = [1, 1]} : vector<2x128xf32> to vector<2x32xf32>
    %423 = vector.extract_strided_slice %420 {offsets = [0, 64], sizes = [2, 32], strides = [1, 1]} : vector<2x128xf32> to vector<2x32xf32>
    %424 = vector.extract_strided_slice %419 {offsets = [0, 96], sizes = [2, 32], strides = [1, 1]} : vector<2x128xf32> to vector<2x32xf32>
    %425 = arith.mulf %422, %390 : vector<2x32xf32>
    %426 = arith.mulf %421, %423 : vector<2x32xf32>
    %427 = arith.addf %425, %426 : vector<2x32xf32>
    %428 = math.tanh %427 : vector<2x32xf32>
    %429 = arith.mulf %424, %428 : vector<2x32xf32>
    %430 = tpu.concatenate %429, %410 in 1 : vector<2x32xf32>, vector<2x32xf32> -> vector<2x64xf32>
    %cst_57 = arith.constant dense<0.000000e+00> : vector<2x128xf32>
    %431 = tpu.matmul %430, %10, %cst_57 {dimension_numbers = #tpu.dot_dimension_numbers<[1], [0], [0], [1], [0, 0, 1, 1], [], []>} : vector<2x64xf32>, vector<64x128xf32>, vector<2x128xf32> -> vector<2x128xf32>
    %432 = arith.addf %431, %5 : vector<2x128xf32>
    %433 = arith.negf %432 : vector<2x128xf32>
    %434 = math.exp %433 : vector<2x128xf32>
    %cst_58 = arith.constant 1.000000e+00 : f32
    %435 = vector.broadcast %cst_58 : f32 to vector<2x128xf32>
    %436 = arith.addf %435, %434 : vector<2x128xf32>
    %437 = arith.divf %435, %436 : vector<2x128xf32>
    %438 = math.tanh %432 : vector<2x128xf32>
    %439 = vector.extract_strided_slice %437 {offsets = [0, 0], sizes = [2, 32], strides = [1, 1]} : vector<2x128xf32> to vector<2x32xf32>
    %440 = vector.extract_strided_slice %437 {offsets = [0, 32], sizes = [2, 32], strides = [1, 1]} : vector<2x128xf32> to vector<2x32xf32>
    %441 = vector.extract_strided_slice %438 {offsets = [0, 64], sizes = [2, 32], strides = [1, 1]} : vector<2x128xf32> to vector<2x32xf32>
    %442 = vector.extract_strided_slice %437 {offsets = [0, 96], sizes = [2, 32], strides = [1, 1]} : vector<2x128xf32> to vector<2x32xf32>
    %443 = arith.mulf %440, %408 : vector<2x32xf32>
    %444 = arith.mulf %439, %441 : vector<2x32xf32>
    %445 = arith.addf %443, %444 : vector<2x32xf32>
    %446 = math.tanh %445 : vector<2x32xf32>
    %447 = arith.mulf %442, %446 : vector<2x32xf32>
    %448 = tpu.concatenate %299, %336, %373, %410, %447 in 0 : vector<2x32xf32>, vector<2x32xf32>, vector<2x32xf32>, vector<2x32xf32>, vector<2x32xf32> -> vector<10x32xf32>
    %449 = vector.broadcast %6 : vector<1x32xf32> to vector<10x32xf32>
    %450 = arith.mulf %448, %449 : vector<10x32xf32>
    %cst_59 = arith.constant dense<0.000000e+00> : vector<10xf32>
    %451 = vector.multi_reduction <add>, %450, %cst_59 [1] : vector<10x32xf32> to vector<10xf32>
    %452 = vector.shape_cast %451 : vector<10xf32> to vector<10x1xf32>
    %453 = vector.broadcast %7 : vector<1x1xf32> to vector<10x1xf32>
    %454 = arith.addf %452, %453 : vector<10x1xf32>
    %c0_60 = arith.constant 0 : index
    %c0_61 = arith.constant 0 : index
    %455 = vector.load %arg2[%c0_60, %c0_61] : memref<10x1xf32, #tpu.memory_space<vmem>>, vector<10x1xf32>
    tpu.vector_store %arg2[%c0_60, %c0_61], %454 {strides = array<i32>} : memref<10x1xf32, #tpu.memory_space<vmem>>, vector<10x1xf32>,
    return
  }
}

</mosaic_0001>

<bundles_post_ra>
// kernel: base_forecast_forward.1
= control target key start
LH: loop header
LB: loop body
LE: loop exit
PB: predicated region body
PF: predicated region fallthrough
CT: control target
= control target key end

     0   :  { %vm15_vm0 = vcmask 64512   ;;  %v2041_v6 = vmov 0.0   ;;  %s2042_s21 = smov 64   ;;  %s2043_s22 = smov 32   ;;  %vm71_vm5 = vcmask 261120   ;;  %vm138_vm6 = vcmask 523264   ;;  %s2638_s1 = inlined_call_operand.vmem [shape: f32[144,128], index: 1, kind: input, shape index: {}]   ;;  %s2639_s0 = inlined_call_operand.vmem [shape: f32[24,8], index: 0, kind: input, shape index: {}]   ;;  %s2640_s2 = inlined_call_operand.vmem [shape: f32[10,1], index: 2, kind: output, shape index: {}]  }
   0x1   :  { %v2063_v0 = vld [vmem:[%s2638_s1 + $0x28] sm:$0xff]  ;;  %v2068_v1 = vld [vmem:[%s2638_s1 + $0x20] sm:$0xff]  ;;  %v2074_v2 = vld [vmem:[%s2638_s1 + $0x18] sm:$0xff]  ;;  %s2044_s27 = smov 96  }
   0x2   :  { %87 = vmatpush.msra.mxu1 %v2063_v0  ;;  %v11_v3 = vld [vmem:[%s2638_s1] sm:$0xff]  ;;  %213 = vmatpush.msra.mxu3 %v2063_v0  ;;  %v2088_v5 = vld [vmem:[%s2638_s1 + $0x10] sm:$0xff]  ;;  %v2111_v30 = vld [vmem:[%s2638_s1 + $0x88] sm:$0xff] }
   0x3   :  { %v12_v4 = vld [vmem:[%s2639_s0] sm:$0xff]  ;;  %40 = vmatpush.msra.mxu0 %v11_v3  ;;  %150 = vmatpush.msra.mxu2 %v2111_v30  ;;  %v2123_v32 = vld [vmem:[%s2638_s1 + $0x78] sm:$0xff]  ;;  %v2131_v33 = vld [vmem:[%s2638_s1 + $0x70] sm:$0xff] }
   0x4   :  { %88 = vmatpush.msra.mxu1 %v2068_v1  ;;  %1779 = vmatmul.msk.f32.vlgmr.msra.gmra.mxu0 %vm15_vm0, %v12_v4  ;;  %v2116_v31 = vld [vmem:[%s2638_s1 + $0x80] sm:$0xff]  ;;  %v2139_v34 = vld [vmem:[%s2638_s1 + $0x68] sm:$0xff]  ;;  %v2155_v36 = vld [vmem:[%s2638_s1 + $0x58] sm:$0xff] }
   0x5   :  { %214 = vmatpush.msra.mxu3 %v2068_v1  ;;  %427 = vmatpush.msrb.mxu0 %v2111_v30  ;;  %v2147_v35 = vld [vmem:[%s2638_s1 + $0x60] sm:$0xff]  ;;  %v2168_v39 = vld [vmem:[%s2638_s1 + $0x50] sm:$0xff]  ;;  %v2208_v45 = vld [vmem:[%s2638_s1 + $0x8] ss:$0 sm:$0xff] }
   0x6   :  { %89 = vmatpush.msra.mxu1 %v2074_v2  ;;  %151 = vmatpush.msra.mxu2 %v2116_v31 }
   0x7   :  { %215 = vmatpush.msra.mxu3 %v2074_v2  ;;  %428 = vmatpush.msrb.mxu0 %v2116_v31 }
   0x8   :  { %90 = vmatpush.msra.mxu1 %v2088_v5  ;;  %152 = vmatpush.msra.mxu2 %v2123_v32 }
   0x9   :  { %91 = vmatmul.f32.vlgmr.msra.gmra.mxu1 %v2041_v6  ;;  %216 = vmatpush.msra.mxu3 %v2088_v5 }
   0xa   :  { %287 = vmatpush.msrb.mxu1 %v2111_v30  ;;  %429 = vmatpush.msrb.mxu0 %v2123_v32 }
   0xb   :  { %353 = vmatpush.msrb.mxu3 %v2063_v0  ;;  %153 = vmatpush.msra.mxu2 %v2131_v33 }
   0xc   :  { %288 = vmatpush.msrb.mxu1 %v2116_v31  ;;  %430 = vmatpush.msrb.mxu0 %v2131_v33 }
   0xd   :  { %354 = vmatpush.msrb.mxu3 %v2068_v1  ;;  %154 = vmatpush.msra.mxu2 %v2139_v34 }
   0xe   :  { %289 = vmatpush.msrb.mxu1 %v2123_v32  ;;  %431 = vmatpush.msrb.mxu0 %v2139_v34 }
   0xf   :  { %355 = vmatpush.msrb.mxu3 %v2074_v2  ;;  %155 = vmatpush.msra.mxu2 %v2147_v35 }
  0x10   :  { %290 = vmatpush.msrb.mxu1 %v2131_v33  ;;  %432 = vmatpush.msrb.mxu0 %v2147_v35 }
  0x11   :  { %356 = vmatpush.msrb.mxu3 %v2088_v5  ;;  %156 = vmatpush.msra.mxu2 %v2155_v36 }
  0x12   :  { %291 = vmatpush.msrb.mxu1 %v2139_v34  ;;  %433 = vmatpush.msrb.mxu0 %v2155_v36 }
  0x13   :  { %157 = vmatpush.msra.mxu2 %v2168_v39 }
  0x14   :  { %292 = vmatpush.msrb.mxu1 %v2147_v35  ;;  %434 = vmatpush.msrb.mxu0 %v2168_v39 }
  0x15   :  { %493 = vmatpush.msrb.mxu2 %v2063_v0 }
  0x16   :  { %293 = vmatpush.msrb.mxu1 %v2155_v36  ;;  %765 = vmatpush.msra.mxu0 %v2063_v0 }
  0x17   :  { %494 = vmatpush.msrb.mxu2 %v2068_v1 }
  0x18   :  { %294 = vmatpush.msrb.mxu1 %v2168_v39  ;;  %766 = vmatpush.msra.mxu0 %v2068_v1 }
  0x19   :  { %495 = vmatpush.msrb.mxu2 %v2074_v2 }
  0x1a   :  { %633 = vmatpush.msra.mxu1 %v2063_v0  ;;  %767 = vmatpush.msra.mxu0 %v2074_v2 }
  0x1b   :  { %496 = vmatpush.msrb.mxu2 %v2088_v5 }
  0x1c   :  { %634 = vmatpush.msra.mxu1 %v2068_v1  ;;  %768 = vmatpush.msra.mxu0 %v2088_v5 }
  0x1e   :  { %635 = vmatpush.msra.mxu1 %v2074_v2 }
  0x20   :  { %636 = vmatpush.msra.mxu1 %v2088_v5 }
  0x81   :  { %v2099_v7 = vpop.f32.mrf.mxu0 }
  0x86   :  { %v92_v8 = vpop.f32.mrf.mxu1 }
  0x87   :  { %v95_v9 = vadd.f32 %v92_v8, %v2099_v7 }
  0x89   :  { %1836 = vtanh.f32 %v95_v9  ;;  %v1782_v11 = vmul.f32 -1.442695, %v95_v9 }
  0x8b   :  { %1838 = vpow2.f32 %v1782_v11 }
  0x8f   :  { %v1837_v10 = vpop.eup %1836 }
  0x90   :  { %118 = vrot.lane.b32.xlu0 %v1837_v10, %s2042_s21 }
  0x91   :  { %v1839_v12 = vpop.eup %1838 }
  0x92   :  { %v99_v13 = vadd.f32 1.0, %v1839_v12 }
  0x94   :  { %1840 = vrcp.f32 %v99_v13  ;;  %v111_v19 = vand.u32 2147483648, %v99_v13  ;;  %vm105_vm2 = vweird.f32 %v99_v13  ;;  %v109_v20 = vand.u32 2147483647, %v99_v13 }
  0x96   :  { %v112_v22 = vor.u32 1.1754944e-38, %v111_v19  ;;  %vm110_vm4 = vcmp.eq.f32.partialorder %v109_v20, 8.507059e+37 }
  0x9a   :  { %v1841_v14 = vpop.eup %1840 }
  0x9b   :  { %v101_v15 = vmul.f32 %v1841_v14, %v99_v13  ;;  %vm106_vm1 = vweird.f32 %v1841_v14 }
  0x9c   :  { %vm107_vm3 = vmor %vm105_vm2, %vm106_vm1 }
  0x9d   :  { %v102_v16 = vsub.f32 1.0, %v101_v15 }
  0x9f   :  { %v103_v17 = vmul.f32 %v1841_v14, %v102_v16 }
  0xa1   :  { %v104_v18 = vadd.f32 %v1841_v14, %v103_v17 }
  0xa3   :  { %v108_v21 = vsel %vm107_vm3, %v1841_v14, %v104_v18 }
  0xa4   :  { %v113_v24 = vsel %vm110_vm4, %v112_v22, %v108_v21 }
  0xa5   :  { %v116_v26 = vmul.f32 0.0, %v113_v24 }
 0x102   :  { %v119_v23 = vpop.permute.xlu0 %118 }
 0x103   :  { %v121_v25 = vmul.f32 %v119_v23, %v113_v24 }
 0x105   :  { %123 = vrot.lane.b32.xlu0 %v121_v25, %s2043_s22 }
 0x177   :  { %v124_v27 = vpop.permute.xlu0 %123 }
 0x178   :  { %v2104_v28 = vadd.f32 %v124_v27, %v116_v26 }
 0x17a   :  { %1842 = vtanh.f32 %v2104_v28  ;;  %v246_v21 = vrot.slane %v2104_v28, 6 }
 0x180   :  { %v1843_v29 = vpop.eup %1842 }
 0x181   :  { %129 = vrot.lane.b32.xlu1 %v1843_v29, %s2042_s21 }
 0x1f3   :  { %v130_v37 = vpop.permute.xlu1 %129 }
 0x1f4   :  { %v132_v38 = vmul.f32 %v130_v37, %v113_v24 }
 0x1f6   :  { %134 = vrot.lane.b32.xlu1 %v132_v38, %s2043_s22 }
 0x268   :  { %v135_v40 = vpop.permute.xlu1 %134 }
 0x269   :  { %1785 = vmatmul.msk.f32.vlgmr.msra.gmra.mxu3 %vm71_vm5, %v135_v40  ;;  %v137_v41 = vsel %vm71_vm5, %v135_v40, 0.0 }
 0x26a   :  { %1783 = vmatmul.msk.f32.vlgmr.msra.gmra.mxu2 %vm138_vm6, %v137_v41  ;;  %567 = vmatpush.msra.mxu3 %v2111_v30 }
 0x26b   :  { %702 = vmatpush.msra.mxu2 %v2111_v30 }
 0x26c   :  { %568 = vmatpush.msra.mxu3 %v2116_v31 }
 0x26d   :  { %703 = vmatpush.msra.mxu2 %v2116_v31 }
 0x26e   :  { %569 = vmatpush.msra.mxu3 %v2123_v32 }
 0x26f   :  { %704 = vmatpush.msra.mxu2 %v2123_v32 }
 0x270   :  { %570 = vmatpush.msra.mxu3 %v2131_v33 }
 0x271   :  { %705 = vmatpush.msra.mxu2 %v2131_v33 }
 0x272   :  { %571 = vmatpush.msra.mxu3 %v2139_v34 }
 0x273   :  { %706 = vmatpush.msra.mxu2 %v2139_v34 }
 0x274   :  { %572 = vmatpush.msra.mxu3 %v2147_v35 }
 0x275   :  { %707 = vmatpush.msra.mxu2 %v2147_v35 }
 0x276   :  { %573 = vmatpush.msra.mxu3 %v2155_v36 }
 0x277   :  { %708 = vmatpush.msra.mxu2 %v2155_v36 }
 0x278   :  { %574 = vmatpush.msra.mxu3 %v2168_v39 }
 0x279   :  { %709 = vmatpush.msra.mxu2 %v2168_v39 }
 0x2ec   :  { %v218_v42 = vpop.f32.mrf.mxu3 }
 0x2ed   :  { %v222_v43 = vrot.slane %v218_v42, 6  ;;  %v159_v46 = vpop.f32.mrf.mxu2 }
 0x2ee   :  { %v160_v47 = vadd.f32 %v2208_v45, %v159_v46 }
 0x2ef   :  { %v224_v44 = vadd.f32 %v222_v43, %v2099_v7 }
 0x2f0   :  { %v1784_v51 = vmul.f32 -1.442695, %v160_v47 }
 0x2f1   :  { %1844 = vtanh.f32 %v224_v44  ;;  %v1786_v50 = vmul.f32 -1.442695, %v224_v44 }
 0x2f2   :  { %1846 = vtanh.f32 %v160_v47 }
 0x2f3   :  { %1848 = vpow2.f32 %v1786_v50 }
 0x2f4   :  { %1850 = vpow2.f32 %v1784_v51 }
 0x2f7   :  { %v1845_v48 = vpop.eup %1844 }
 0x2f8   :  { %250 = vrot.lane.b32.xlu2 %v1845_v48, %s2042_s21  ;;  %v1847_v49 = vpop.eup %1846 }
 0x2f9   :  { %v1849_v52 = vpop.eup %1848 }
 0x2fa   :  { %v228_v53 = vadd.f32 1.0, %v1849_v52  ;;  %v1851_v54 = vpop.eup %1850 }
 0x2fb   :  { %v165_v55 = vadd.f32 1.0, %v1851_v54 }
 0x2fc   :  { %1852 = vrcp.f32 %v228_v53  ;;  %v240_v3 = vand.u32 2147483648, %v228_v53  ;;  %vm234_vm8 = vweird.f32 %v228_v53  ;;  %v238_v4 = vand.u32 2147483647, %v228_v53 }
 0x2fd   :  { %1854 = vrcp.f32 %v165_v55  ;;  %v177_v14 = vand.u32 2147483648, %v165_v55  ;;  %vm171_vm12 = vweird.f32 %v165_v55  ;;  %v175_v15 = vand.u32 2147483647, %v165_v55 }
 0x2fe   :  { %v241_v9 = vor.u32 1.1754944e-38, %v240_v3  ;;  %vm239_vm10 = vcmp.eq.f32.partialorder %v238_v4, 8.507059e+37 }
 0x2ff   :  { %v178_v17 = vor.u32 1.1754944e-38, %v177_v14  ;;  %vm176_vm14 = vcmp.eq.f32.partialorder %v175_v15, 8.507059e+37 }
 0x300   :  { %184 = vrot.lane.b32.xlu2 %v1847_v49, %s2042_s21 }
 0x302   :  { %v1853_v56 = vpop.eup %1852 }
 0x303   :  { %v230_v57 = vmul.f32 %v1853_v56, %v228_v53  ;;  %v1855_v59 = vpop.eup %1854  ;;  %vm235_vm7 = vweird.f32 %v1853_v56 }
 0x304   :  { %v167_v61 = vmul.f32 %v1855_v59, %v165_v55  ;;  %vm236_vm9 = vmor %vm234_vm8, %vm235_vm7  ;;  %vm172_vm11 = vweird.f32 %v1855_v59 }
 0x305   :  { %v231_v58 = vsub.f32 1.0, %v230_v57  ;;  %vm173_vm13 = vmor %vm171_vm12, %vm172_vm11 }
 0x306   :  { %v168_v63 = vsub.f32 1.0, %v167_v61 }
 0x307   :  { %v232_v60 = vmul.f32 %v1853_v56, %v231_v58 }
 0x308   :  { %v169_v8 = vmul.f32 %v1855_v59, %v168_v63 }
 0x309   :  { %v233_v62 = vadd.f32 %v1853_v56, %v232_v60 }
 0x30a   :  { %v170_v13 = vadd.f32 %v1855_v59, %v169_v8 }
 0x30b   :  { %v237_v6 = vsel %vm236_vm9, %v1853_v56, %v233_v62 }
 0x30c   :  { %v242_v11 = vsel %vm239_vm10, %v241_v9, %v237_v6  ;;  %v174_v16 = vsel %vm173_vm13, %v1855_v59, %v170_v13 }
 0x30d   :  { %v179_v19 = vsel %vm176_vm14, %v178_v17, %v174_v16  ;;  %v248_v22 = vmul.f32 %v246_v21, %v242_v11 }
 0x30e   :  { %v182_v25 = vmul.f32 0.0, %v179_v19 }
 0x352   :  { %v251_v10 = vpop.permute.xlu2 %250 }
 0x353   :  { %v253_v12 = vmul.f32 %v251_v10, %v242_v11 }
 0x355   :  { %255 = vrot.lane.b32.xlu0 %v253_v12, %s2043_s22 }
 0x35a   :  { %v185_v18 = vpop.permute.xlu2 %184 }
 0x35b   :  { %v187_v20 = vmul.f32 %v185_v18, %v179_v19 }
 0x35d   :  { %189 = vrot.lane.b32.xlu1 %v187_v20, %s2043_s22 }
 0x3c7   :  { %v256_v23 = vpop.permute.xlu0 %255 }
 0x3c8   :  { %v2216_v24 = vadd.f32 %v256_v23, %v248_v22 }
 0x3ca   :  { %1856 = vtanh.f32 %v2216_v24 }
 0x3cf   :  { %v190_v26 = vpop.permute.xlu1 %189 }
 0x3d0   :  { %v1857_v27 = vpop.eup %1856  ;;  %v2219_v29 = vadd.f32 %v190_v26, %v182_v25 }
 0x3d1   :  { %261 = vrot.lane.b32.xlu2 %v1857_v27, %s2042_s21 }
 0x3d2   :  { %1858 = vtanh.f32 %v2219_v29 }
 0x3d8   :  { %v1859_v37 = vpop.eup %1858 }
 0x3d9   :  { %195 = vrot.lane.b32.xlu0 %v1859_v37, %s2042_s21 }
 0x42b   :  { %v262_v38 = vpop.permute.xlu2 %261 }
 0x42c   :  { %v264_v28 = vmul.f32 %v262_v38, %v242_v11  ;;  %v386_v38 = vrot.slane %v2216_v24, 6 }
 0x42e   :  { %v336_v40 = vrot.slane %v264_v28, 2  ;;  %266 = vrot.lane.b32.xlu2 %v264_v28, %s2043_s22 }
 0x430   :  { %337 = vrot.lane.b32.xlu1 %v336_v40, %s2043_s22 }
 0x44b   :  { %v196_v41 = vpop.permute.xlu0 %195 }
 0x44c   :  { %v198_v42 = vmul.f32 %v196_v41, %v179_v19 }
 0x44e   :  { %v270_v43 = vrot.slane %v198_v42, 6 }
 0x450   :  { %271 = vrot.lane.b32.xlu0 %v270_v43, %s2042_s21 }
 0x488   :  { %v267_v46 = vpop.permute.xlu2 %266 }
 0x4a2   :  { %v338_v44 = vpop.permute.xlu1 %337 }
 0x4a3   :  { %1789 = vmatmul.msk.f32.vlgmr.msrb.gmra.mxu3 %vm71_vm5, %v338_v44 }
 0x4a4   :  { %905 = vmatpush.msrb.mxu3 %v2063_v0 }
 0x4a6   :  { %906 = vmatpush.msrb.mxu3 %v2068_v1 }
 0x4a8   :  { %907 = vmatpush.msrb.mxu3 %v2074_v2 }
 0x4aa   :  { %908 = vmatpush.msrb.mxu3 %v2088_v5 }
 0x4c2   :  { %v272_v47 = vpop.permute.xlu0 %271 }
 0x4c3   :  { %v274_v48 = vsel %vm71_vm5, %v267_v46, %v272_v47 }
 0x4c4   :  { %v276_v49 = vrot.slane %v274_v48, 2 }
 0x4c6   :  { %1787 = vmatmul.msk.f32.vlgmr.msrb.gmra.mxu1 %vm138_vm6, %v276_v49 }
 0x4c7   :  { %839 = vmatpush.msrb.mxu1 %v2111_v30 }
 0x4c9   :  { %840 = vmatpush.msrb.mxu1 %v2116_v31 }
 0x4cb   :  { %841 = vmatpush.msrb.mxu1 %v2123_v32 }
 0x4cd   :  { %842 = vmatpush.msrb.mxu1 %v2131_v33 }
 0x4cf   :  { %843 = vmatpush.msrb.mxu1 %v2139_v34 }
 0x4d1   :  { %844 = vmatpush.msrb.mxu1 %v2147_v35 }
 0x4d3   :  { %845 = vmatpush.msrb.mxu1 %v2155_v36 }
 0x4d5   :  { %846 = vmatpush.msrb.mxu1 %v2168_v39 }
 0x526   :  { %v358_v50 = vpop.f32.mrf.mxu3 }
 0x527   :  { %v362_v51 = vrot.slane %v358_v50, 4 }
 0x529   :  { %v364_v52 = vadd.f32 %v362_v51, %v2099_v7 }
 0x52b   :  { %1860 = vtanh.f32 %v364_v52  ;;  %v1790_v57 = vmul.f32 -1.442695, %v364_v52  ;;  %v13_v52 = vld [vmem:[%s2639_s0 + $0x8] sm:$0xff] }
 0x52c   :  { %1780 = vmatmul.msk.f32.gmra.mxu0 %vm15_vm0, %v13_v52 }
 0x531   :  { %v1861_v53 = vpop.eup %1860 }
 0x532   :  { %390 = vrot.lane.b32.xlu1 %v1861_v53, %s2042_s21  ;;  %v14_v53 = vld [vmem:[%s2639_s0 + $0x10] sm:$0xff] }
 0x534   :  { %1781 = vmatmul.msk.f32.gmra.mxu0 %vm15_vm0, %v14_v53 }
 0x543   :  { %v296_v54 = vpop.f32.mrf.mxu1 }
 0x544   :  { %v297_v55 = vadd.f32 %v2208_v45, %v296_v54 }
 0x546   :  { %1862 = vtanh.f32 %v297_v55  ;;  %v1788_v58 = vmul.f32 -1.442695, %v297_v55 }
 0x547   :  { %1864 = vpow2.f32 %v1790_v57 }
 0x548   :  { %1866 = vpow2.f32 %v1788_v58 }
 0x54c   :  { %v1863_v56 = vpop.eup %1862 }
 0x54d   :  { %321 = vrot.lane.b32.xlu2 %v1863_v56, %s2042_s21  ;;  %v1865_v59 = vpop.eup %1864 }
 0x54e   :  { %v1867_v60 = vpop.eup %1866  ;;  %v368_v61 = vadd.f32 1.0, %v1865_v59 }
 0x54f   :  { %v302_v62 = vadd.f32 1.0, %v1867_v60 }
 0x550   :  { %1868 = vrcp.f32 %v368_v61  ;;  %v380_v13 = vand.u32 2147483648, %v368_v61  ;;  %vm374_vm1 = vweird.f32 %v368_v61  ;;  %v378_v14 = vand.u32 2147483647, %v368_v61 }
 0x551   :  { %1870 = vrcp.f32 %v302_v62  ;;  %v314_v17 = vand.u32 2147483648, %v302_v62  ;;  %vm308_vm4 = vweird.f32 %v302_v62  ;;  %v312_v19 = vand.u32 2147483647, %v302_v62 }
 0x552   :  { %v381_v18 = vor.u32 1.1754944e-38, %v380_v13  ;;  %vm379_vm7 = vcmp.eq.f32.partialorder %v378_v14, 8.507059e+37 }
 0x553   :  { %v315_v25 = vor.u32 1.1754944e-38, %v314_v17  ;;  %vm313_vm9 = vcmp.eq.f32.partialorder %v312_v19, 8.507059e+37 }
 0x556   :  { %v1869_v63 = vpop.eup %1868 }
 0x557   :  { %v1871_v3 = vpop.eup %1870  ;;  %v370_v4 = vmul.f32 %v1869_v63, %v368_v61  ;;  %vm375_vm15 = vweird.f32 %v1869_v63 }
 0x558   :  { %v304_v6 = vmul.f32 %v1871_v3, %v302_v62  ;;  %vm376_vm2 = vmor %vm374_vm1, %vm375_vm15  ;;  %vm309_vm3 = vweird.f32 %v1871_v3 }
 0x559   :  { %v371_v8 = vsub.f32 1.0, %v370_v4  ;;  %vm310_vm8 = vmor %vm308_vm4, %vm309_vm3 }
 0x55a   :  { %v305_v9 = vsub.f32 1.0, %v304_v6 }
 0x55b   :  { %v372_v10 = vmul.f32 %v1869_v63, %v371_v8 }
 0x55c   :  { %v306_v11 = vmul.f32 %v1871_v3, %v305_v9 }
 0x55d   :  { %v373_v12 = vadd.f32 %v1869_v63, %v372_v10 }
 0x55e   :  { %v307_v15 = vadd.f32 %v1871_v3, %v306_v11 }
 0x55f   :  { %v377_v16 = vsel %vm376_vm2, %v1869_v63, %v373_v12 }
 0x560   :  { %v382_v21 = vsel %vm379_vm7, %v381_v18, %v377_v16  ;;  %v311_v22 = vsel %vm310_vm8, %v1871_v3, %v307_v15 }
 0x561   :  { %v316_v27 = vsel %vm313_vm9, %v315_v25, %v311_v22  ;;  %v388_v28 = vmul.f32 %v386_v38, %v382_v21 }
 0x562   :  { %v319_v42 = vmul.f32 %v316_v27, %v2219_v29 }
 0x5a4   :  { %v391_v20 = vpop.permute.xlu1 %390 }
 0x5a5   :  { %v393_v23 = vmul.f32 %v391_v20, %v382_v21 }
 0x5a7   :  { %395 = vrot.lane.b32.xlu0 %v393_v23, %s2043_s22  ;;  %v322_v26 = vpop.permute.xlu2 %321 }
 0x5a8   :  { %v324_v37 = vmul.f32 %v322_v26, %v316_v27 }
 0x5aa   :  { %326 = vrot.lane.b32.xlu1 %v324_v37, %s2043_s22 }
 0x619   :  { %v396_v40 = vpop.permute.xlu0 %395 }
 0x61a   :  { %v2249_v41 = vadd.f32 %v396_v40, %v388_v28 }
 0x61c   :  { %1872 = vtanh.f32 %v2249_v41  ;;  %v327_v43 = vpop.permute.xlu1 %326 }
 0x61d   :  { %v2253_v44 = vadd.f32 %v327_v43, %v319_v42 }
 0x61f   :  { %1874 = vtanh.f32 %v2253_v44 }
 0x622   :  { %v1873_v46 = vpop.eup %1872 }
 0x623   :  { %401 = vrot.lane.b32.xlu2 %v1873_v46, %s2042_s21 }
 0x625   :  { %v1875_v47 = vpop.eup %1874 }
 0x626   :  { %332 = vrot.lane.b32.xlu0 %v1875_v47, %s2042_s21  ;;  %v526_v47 = vrot.slane %v2249_v41, 6 }
 0x67d   :  { %v402_v24 = vpop.permute.xlu2 %401 }
 0x67e   :  { %v404_v48 = vmul.f32 %v402_v24, %v382_v21 }
 0x680   :  { %v476_v49 = vrot.slane %v404_v48, 4  ;;  %406 = vrot.lane.b32.xlu2 %v404_v48, %s2043_s22 }
 0x682   :  { %477 = vrot.lane.b32.xlu1 %v476_v49, %s2043_s22 }
 0x698   :  { %v333_v29 = vpop.permute.xlu0 %332 }
 0x699   :  { %v335_v50 = vmul.f32 %v333_v29, %v316_v27 }
 0x69b   :  { %v410_v51 = vrot.slane %v335_v50, 4 }
 0x69d   :  { %411 = vrot.lane.b32.xlu0 %v410_v51, %s2042_s21 }
 0x6da   :  { %v407_v55 = vpop.permute.xlu2 %406 }
 0x6f4   :  { %v478_v54 = vpop.permute.xlu1 %477 }
 0x6f5   :  { %1793 = vmatmul.msk.f32.vlgmr.msrb.gmra.mxu2 %vm71_vm5, %v478_v54 }
 0x6f6   :  { %1045 = vmatpush.msrb.mxu2 %v2063_v0 }
 0x6f8   :  { %1046 = vmatpush.msrb.mxu2 %v2068_v1 }
 0x6fa   :  { %1047 = vmatpush.msrb.mxu2 %v2074_v2 }
 0x6fc   :  { %1048 = vmatpush.msrb.mxu2 %v2088_v5  ;;  %v2285_v5 = vpop.f32.mrf.mxu0 }
 0x704   :  { %v2288_v60 = vpop.f32.mrf.mxu0 }
 0x70f   :  { %v412_v56 = vpop.permute.xlu0 %411 }
 0x710   :  { %v414_v57 = vsel %vm71_vm5, %v407_v55, %v412_v56 }
 0x711   :  { %v416_v58 = vrot.slane %v414_v57, 4 }
 0x713   :  { %1791 = vmatmul.msk.f32.vlgmr.msrb.gmra.mxu0 %vm138_vm6, %v416_v58 }
 0x714   :  { %979 = vmatpush.msrb.mxu0 %v2111_v30 }
 0x716   :  { %980 = vmatpush.msrb.mxu0 %v2116_v31 }
 0x718   :  { %981 = vmatpush.msrb.mxu0 %v2123_v32 }
 0x71a   :  { %982 = vmatpush.msrb.mxu0 %v2131_v33 }
 0x71c   :  { %983 = vmatpush.msrb.mxu0 %v2139_v34 }
 0x71e   :  { %984 = vmatpush.msrb.mxu0 %v2147_v35 }
 0x720   :  { %985 = vmatpush.msrb.mxu0 %v2155_v36 }
 0x722   :  { %986 = vmatpush.msrb.mxu0 %v2168_v39 }
 0x778   :  { %v498_v0 = vpop.f32.mrf.mxu2 }
 0x779   :  { %v502_v1 = vrot.slane %v498_v0, 2 }
 0x77b   :  { %v504_v2 = vadd.f32 %v502_v1, %v2099_v7 }
 0x77d   :  { %1876 = vtanh.f32 %v504_v2  ;;  %v1794_v3 = vmul.f32 -1.442695, %v504_v2 }
 0x783   :  { %v1877_v59 = vpop.eup %1876 }
 0x784   :  { %530 = vrot.lane.b32.xlu2 %v1877_v59, %s2042_s21 }
 0x790   :  { %v436_v61 = vpop.f32.mrf.mxu0 }
 0x791   :  { %v437_v62 = vadd.f32 %v2208_v45, %v436_v61 }
 0x793   :  { %1878 = vtanh.f32 %v437_v62  ;;  %v1792_v18 = vmul.f32 -1.442695, %v437_v62 }
 0x794   :  { %1880 = vpow2.f32 %v1794_v3 }
 0x799   :  { %v1879_v63 = vpop.eup %1878 }
 0x79a   :  { %461 = vrot.lane.b32.xlu1 %v1879_v63, %s2042_s21  ;;  %v1881_v4 = vpop.eup %1880 }
 0x79b   :  { %v508_v6 = vadd.f32 1.0, %v1881_v4 }
 0x79d   :  { %1882 = vrcp.f32 %v508_v6  ;;  %v520_v12 = vand.u32 2147483648, %v508_v6  ;;  %vm514_vm10 = vweird.f32 %v508_v6  ;;  %v518_v13 = vand.u32 2147483647, %v508_v6 }
 0x79e   :  { %1884 = vpow2.f32 %v1792_v18 }
 0x79f   :  { %v521_v15 = vor.u32 1.1754944e-38, %v520_v12  ;;  %vm519_vm12 = vcmp.eq.f32.partialorder %v518_v13, 8.507059e+37 }
 0x7a3   :  { %v1883_v7 = vpop.eup %1882 }
 0x7a4   :  { %v510_v8 = vmul.f32 %v1883_v7, %v508_v6  ;;  %vm515_vm0 = vweird.f32 %v1883_v7  ;;  %v1885_v20 = vpop.eup %1884 }
 0x7a5   :  { %vm516_vm11 = vmor %vm514_vm10, %vm515_vm0  ;;  %v442_v21 = vadd.f32 1.0, %v1885_v20 }
 0x7a6   :  { %v511_v9 = vsub.f32 1.0, %v510_v8 }
 0x7a7   :  { %1886 = vrcp.f32 %v442_v21  ;;  %v454_v37 = vand.u32 2147483648, %v442_v21  ;;  %vm448_vm14 = vweird.f32 %v442_v21  ;;  %v452_v38 = vand.u32 2147483647, %v442_v21 }
 0x7a8   :  { %v512_v10 = vmul.f32 %v1883_v7, %v511_v9 }
 0x7a9   :  { %v455_v40 = vor.u32 1.1754944e-38, %v454_v37  ;;  %vm453_vm1 = vcmp.eq.f32.partialorder %v452_v38, 8.507059e+37 }
 0x7aa   :  { %v513_v11 = vadd.f32 %v1883_v7, %v512_v10 }
 0x7ac   :  { %v517_v14 = vsel %vm516_vm11, %v1883_v7, %v513_v11 }
 0x7ad   :  { %v522_v17 = vsel %vm519_vm12, %v521_v15, %v517_v14  ;;  %v1887_v22 = vpop.eup %1886 }
 0x7ae   :  { %v444_v23 = vmul.f32 %v1887_v22, %v442_v21  ;;  %vm449_vm13 = vweird.f32 %v1887_v22  ;;  %v528_v24 = vmul.f32 %v526_v47, %v522_v17 }
 0x7af   :  { %vm450_vm15 = vmor %vm448_vm14, %vm449_vm13 }
 0x7b0   :  { %v445_v25 = vsub.f32 1.0, %v444_v23 }
 0x7b2   :  { %v446_v26 = vmul.f32 %v1887_v22, %v445_v25 }
 0x7b4   :  { %v447_v27 = vadd.f32 %v1887_v22, %v446_v26 }
 0x7b6   :  { %v451_v28 = vsel %vm450_vm15, %v1887_v22, %v447_v27 }
 0x7b7   :  { %v456_v43 = vsel %vm453_vm1, %v455_v40, %v451_v28 }
 0x7b8   :  { %v459_v50 = vmul.f32 %v456_v43, %v2253_v44 }
 0x7de   :  { %v531_v16 = vpop.permute.xlu2 %530 }
 0x7df   :  { %v533_v19 = vmul.f32 %v531_v16, %v522_v17 }
 0x7e1   :  { %535 = vrot.lane.b32.xlu1 %v533_v19, %s2043_s22 }
 0x80c   :  { %v462_v42 = vpop.permute.xlu1 %461 }
 0x80d   :  { %v464_v46 = vmul.f32 %v462_v42, %v456_v43 }
 0x80f   :  { %466 = vrot.lane.b32.xlu0 %v464_v46, %s2043_s22 }
 0x853   :  { %v536_v48 = vpop.permute.xlu1 %535 }
 0x854   :  { %v2295_v49 = vadd.f32 %v536_v48, %v528_v24 }
 0x856   :  { %1888 = vtanh.f32 %v2295_v49 }
 0x85c   :  { %v1889_v29 = vpop.eup %1888 }
 0x85d   :  { %541 = vrot.lane.b32.xlu0 %v1889_v29, %s2042_s21 }
 0x881   :  { %v467_v51 = vpop.permute.xlu0 %466 }
 0x882   :  { %v2300_v52 = vadd.f32 %v467_v51, %v459_v50 }
 0x884   :  { %1890 = vtanh.f32 %v2300_v52 }
 0x88a   :  { %v1891_v53 = vpop.eup %1890 }
 0x88b   :  { %472 = vrot.lane.b32.xlu2 %v1891_v53, %s2042_s21 }
 0x8cf   :  { %v542_v41 = vpop.permute.xlu0 %541 }
 0x8d0   :  { %v544_v54 = vmul.f32 %v542_v41, %v522_v17  ;;  %v663_v41 = vrot.slane %v2295_v49, 6 }
 0x8d2   :  { %v616_v55 = vrot.slane %v544_v54, 6  ;;  %546 = vrot.lane.b32.xlu1 %v544_v54, %s2043_s22 }
 0x8d4   :  { %617 = vrot.lane.b32.xlu0 %v616_v55, %s2043_s22 }
 0x8e5   :  { %v473_v56 = vpop.permute.xlu2 %472 }
 0x8e6   :  { %v475_v57 = vmul.f32 %v473_v56, %v456_v43 }
 0x8e8   :  { %v550_v58 = vrot.slane %v475_v57, 2 }
 0x8ea   :  { %551 = vrot.lane.b32.xlu2 %v550_v58, %s2042_s21 }
 0x944   :  { %v547_v44 = vpop.permute.xlu1 %546  ;;  %v552_v0 = vpop.permute.xlu2 %551 }
 0x945   :  { %v554_v1 = vsel %vm71_vm5, %v547_v44, %v552_v0 }
 0x946   :  { %v556_v2 = vrot.slane %v554_v1, 6  ;;  %v618_v59 = vpop.permute.xlu0 %617 }
 0x947   :  { %1797 = vmatmul.msk.f32.vlgmr.msra.gmra.mxu1 %vm71_vm5, %v618_v59 }
 0x948   :  { %1795 = vmatmul.msk.f32.vlgmr.msra.gmra.mxu3 %vm138_vm6, %v556_v2 }
 0x949   :  { %1119 = vmatpush.msra.mxu3 %v2111_v30 }
 0x94b   :  { %1120 = vmatpush.msra.mxu3 %v2116_v31 }
 0x94d   :  { %1121 = vmatpush.msra.mxu3 %v2123_v32 }
 0x94f   :  { %1122 = vmatpush.msra.mxu3 %v2131_v33 }
 0x951   :  { %1123 = vmatpush.msra.mxu3 %v2139_v34 }
 0x953   :  { %1124 = vmatpush.msra.mxu3 %v2147_v35 }
 0x955   :  { %1125 = vmatpush.msra.mxu3 %v2155_v36 }
 0x957   :  { %1126 = vmatpush.msra.mxu3 %v2168_v39 }
 0x9c4   :  { %v638_v61 = vpop.f32.mrf.mxu1 }
 0x9c5   :  { %v641_v62 = vadd.f32 %v638_v61, %v2285_v5 }
 0x9c7   :  { %1892 = vtanh.f32 %v641_v62  ;;  %v1798_v10 = vmul.f32 -1.442695, %v641_v62 }
 0x9cb   :  { %v576_v63 = vpop.f32.mrf.mxu3 }
 0x9cc   :  { %v577_v3 = vadd.f32 %v2208_v45, %v576_v63 }
 0x9cd   :  { %v1893_v4 = vpop.eup %1892 }
 0x9ce   :  { %1894 = vtanh.f32 %v577_v3  ;;  %667 = vrot.lane.b32.xlu1 %v1893_v4, %s2042_s21  ;;  %v1796_v7 = vmul.f32 -1.442695, %v577_v3 }
 0x9d0   :  { %1896 = vpow2.f32 %v1796_v7 }
 0x9d4   :  { %v1895_v6 = vpop.eup %1894 }
 0x9d5   :  { %601 = vrot.lane.b32.xlu2 %v1895_v6, %s2042_s21 }
 0x9d6   :  { %v1897_v8 = vpop.eup %1896 }
 0x9d7   :  { %v582_v9 = vadd.f32 1.0, %v1897_v8 }
 0x9d9   :  { %1898 = vrcp.f32 %v582_v9  ;;  %v594_v18 = vand.u32 2147483648, %v582_v9  ;;  %vm588_vm3 = vweird.f32 %v582_v9  ;;  %v592_v20 = vand.u32 2147483647, %v582_v9 }
 0x9da   :  { %1900 = vpow2.f32 %v1798_v10 }
 0x9db   :  { %v595_v22 = vor.u32 1.1754944e-38, %v594_v18  ;;  %vm593_vm7 = vcmp.eq.f32.partialorder %v592_v20, 8.507059e+37 }
 0x9df   :  { %v1899_v11 = vpop.eup %1898 }
 0x9e0   :  { %v584_v12 = vmul.f32 %v1899_v11, %v582_v9  ;;  %v1901_v13 = vpop.eup %1900  ;;  %vm589_vm2 = vweird.f32 %v1899_v11 }
 0x9e1   :  { %v645_v14 = vadd.f32 1.0, %v1901_v13  ;;  %vm590_vm4 = vmor %vm588_vm3, %vm589_vm2 }
 0x9e2   :  { %v585_v15 = vsub.f32 1.0, %v584_v12 }
 0x9e3   :  { %1902 = vrcp.f32 %v645_v14  ;;  %v657_v40 = vand.u32 2147483648, %v645_v14  ;;  %vm651_vm9 = vweird.f32 %v645_v14  ;;  %v655_v42 = vand.u32 2147483647, %v645_v14 }
 0x9e4   :  { %v586_v16 = vmul.f32 %v1899_v11, %v585_v15 }
 0x9e5   :  { %v658_v46 = vor.u32 1.1754944e-38, %v657_v40  ;;  %vm656_vm10 = vcmp.eq.f32.partialorder %v655_v42, 8.507059e+37 }
 0x9e6   :  { %v587_v17 = vadd.f32 %v1899_v11, %v586_v16 }
 0x9e8   :  { %v591_v21 = vsel %vm590_vm4, %v1899_v11, %v587_v17 }
 0x9e9   :  { %v1903_v19 = vpop.eup %1902  ;;  %v596_v26 = vsel %vm593_vm7, %v595_v22, %v591_v21 }
 0x9ea   :  { %v647_v23 = vmul.f32 %v1903_v19, %v645_v14  ;;  %vm652_vm8 = vweird.f32 %v1903_v19  ;;  %v599_v29 = vmul.f32 %v596_v26, %v2300_v52 }
 0x9eb   :  { %vm653_vm0 = vmor %vm651_vm9, %vm652_vm8 }
 0x9ec   :  { %v648_v37 = vsub.f32 1.0, %v647_v23 }
 0x9ee   :  { %v649_v38 = vmul.f32 %v1903_v19, %v648_v37 }
 0x9f0   :  { %v650_v28 = vadd.f32 %v1903_v19, %v649_v38 }
 0x9f2   :  { %v654_v43 = vsel %vm653_vm0, %v1903_v19, %v650_v28 }
 0x9f3   :  { %v659_v24 = vsel %vm656_vm10, %v658_v46, %v654_v43 }
 0x9f4   :  { %v665_v54 = vmul.f32 %v663_v41, %v659_v24 }
 0xa2f   :  { %v602_v25 = vpop.permute.xlu2 %601 }
 0xa30   :  { %v604_v27 = vmul.f32 %v602_v25, %v596_v26 }
 0xa32   :  { %606 = vrot.lane.b32.xlu1 %v604_v27, %s2043_s22 }
 0xa40   :  { %v668_v47 = vpop.permute.xlu1 %667 }
 0xa41   :  { %v670_v48 = vmul.f32 %v668_v47, %v659_v24 }
 0xa43   :  { %672 = vrot.lane.b32.xlu0 %v670_v48, %s2043_s22 }
 0xaa4   :  { %v607_v50 = vpop.permute.xlu1 %606 }
 0xaa5   :  { %v2325_v51 = vadd.f32 %v607_v50, %v599_v29 }
 0xaa7   :  { %1904 = vtanh.f32 %v2325_v51 }
 0xaad   :  { %v1905_v53 = vpop.eup %1904 }
 0xaae   :  { %612 = vrot.lane.b32.xlu0 %v1905_v53, %s2042_s21 }
 0xab5   :  { %v673_v55 = vpop.permute.xlu0 %672 }
 0xab6   :  { %v2330_v56 = vadd.f32 %v673_v55, %v665_v54 }
 0xab8   :  { %1906 = vtanh.f32 %v2330_v56  ;;  %v798_v40 = vrot.slane %v2330_v56, 6 }
 0xabe   :  { %v1907_v57 = vpop.eup %1906 }
 0xabf   :  { %678 = vrot.lane.b32.xlu2 %v1907_v57, %s2042_s21 }
 0xb19   :  { %v679_v52 = vpop.permute.xlu2 %678 }
 0xb1a   :  { %v681_v58 = vmul.f32 %v679_v52, %v659_v24 }
 0xb1c   :  { %683 = vrot.lane.b32.xlu1 %v681_v58, %s2043_s22 }
 0xb20   :  { %v613_v44 = vpop.permute.xlu0 %612 }
 0xb21   :  { %v615_v0 = vmul.f32 %v613_v44, %v596_v26 }
 0xb23   :  { %687 = vrot.lane.b32.xlu2 %v615_v0, %s2042_s21 }
 0xb7d   :  { %v688_v1 = vpop.permute.xlu2 %687 }
 0xb8e   :  { %v684_v2 = vpop.permute.xlu1 %683 }
 0xb8f   :  { %v690_v49 = vsel %vm71_vm5, %v684_v2, %v688_v1  ;;  %1801 = vmatmul.msk.f32.vlgmr.msra.gmra.mxu0 %vm71_vm5, %v684_v2  ;;  %v2372_v1 = vld [vmem:[%s2638_s1 + $0x88] sm:$0xff]  ;;  %v2378_v2 = vld [vmem:[%s2638_s1 + $0x80] sm:$0xff] }
 0xb90   :  { %1799 = vmatmul.msk.f32.vlgmr.msra.gmra.mxu2 %vm138_vm6, %v690_v49  ;;  %v2384_v49 = vld [vmem:[%s2638_s1 + $0x78] sm:$0xff] }
 0xb91   :  { %1258 = vmatpush.msra.mxu2 %v2111_v30 }
 0xb93   :  { %1259 = vmatpush.msra.mxu2 %v2116_v31 }
 0xb95   :  { %1260 = vmatpush.msra.mxu2 %v2123_v32 }
 0xb97   :  { %1261 = vmatpush.msra.mxu2 %v2131_v33 }
 0xb99   :  { %1262 = vmatpush.msra.mxu2 %v2139_v34 }
 0xb9b   :  { %1263 = vmatpush.msra.mxu2 %v2147_v35 }
 0xb9d   :  { %1264 = vmatpush.msra.mxu2 %v2155_v36 }
 0xb9f   :  { %1265 = vmatpush.msra.mxu2 %v2168_v39 }
 0xc0c   :  { %v770_v59 = vpop.f32.mrf.mxu0 }
 0xc0d   :  { %v774_v61 = vrot.slane %v770_v59, 6  ;;  %v2390_v59 = vld [vmem:[%s2638_s1 + $0x70] sm:$0xff] }
 0xc0f   :  { %v776_v62 = vadd.f32 %v774_v61, %v2285_v5  ;;  %v2396_v61 = vld [vmem:[%s2638_s1 + $0x68] sm:$0xff] }
 0xc11   :  { %1908 = vtanh.f32 %v776_v62  ;;  %v1802_v34 = vmul.f32 -1.442695, %v776_v62  ;;  %v2402_v62 = vld [vmem:[%s2638_s1 + $0x60] sm:$0xff] }
 0xc13   :  { %v711_v30 = vpop.f32.mrf.mxu2 }
 0xc14   :  { %v712_v31 = vadd.f32 %v2208_v45, %v711_v30  ;;  %v2408_v30 = vld [vmem:[%s2638_s1 + $0x58] sm:$0xff] }
 0xc16   :  { %1910 = vtanh.f32 %v712_v31  ;;  %v1800_v35 = vmul.f32 -1.442695, %v712_v31 }
 0xc17   :  { %v1909_v32 = vpop.eup %1908  ;;  %1912 = vpow2.f32 %v1802_v34 }
 0xc18   :  { %802 = vrot.lane.b32.xlu0 %v1909_v32, %s2042_s21  ;;  %1914 = vpow2.f32 %v1800_v35 }
 0xc1c   :  { %v1911_v33 = vpop.eup %1910 }
 0xc1d   :  { %736 = vrot.lane.b32.xlu1 %v1911_v33, %s2042_s21  ;;  %v1913_v36 = vpop.eup %1912 }
 0xc1e   :  { %v780_v63 = vadd.f32 1.0, %v1913_v36  ;;  %v1915_v3 = vpop.eup %1914 }
 0xc1f   :  { %v717_v4 = vadd.f32 1.0, %v1915_v3 }
 0xc20   :  { %1916 = vrcp.f32 %v780_v63  ;;  %v792_v14 = vand.u32 2147483648, %v780_v63  ;;  %vm786_vm12 = vweird.f32 %v780_v63  ;;  %v790_v16 = vand.u32 2147483647, %v780_v63 }
 0xc21   :  { %1918 = vrcp.f32 %v717_v4  ;;  %v729_v20 = vand.u32 2147483648, %v717_v4  ;;  %vm723_vm1 = vweird.f32 %v717_v4  ;;  %v727_v23 = vand.u32 2147483647, %v717_v4 }
 0xc22   :  { %v793_v18 = vor.u32 1.1754944e-38, %v792_v14  ;;  %vm791_vm15 = vcmp.eq.f32.partialorder %v790_v16, 8.507059e+37 }
 0xc23   :  { %v730_v27 = vor.u32 1.1754944e-38, %v729_v20  ;;  %vm728_vm3 = vcmp.eq.f32.partialorder %v727_v23, 8.507059e+37 }
 0xc26   :  { %v1917_v6 = vpop.eup %1916 }
 0xc27   :  { %v782_v7 = vmul.f32 %v1917_v6, %v780_v63  ;;  %v1919_v8 = vpop.eup %1918  ;;  %vm787_vm11 = vweird.f32 %v1917_v6 }
 0xc28   :  { %v719_v10 = vmul.f32 %v1919_v8, %v717_v4  ;;  %vm788_vm13 = vmor %vm786_vm12, %vm787_vm11  ;;  %vm724_vm14 = vweird.f32 %v1919_v8 }
 0xc29   :  { %v783_v9 = vsub.f32 1.0, %v782_v7  ;;  %vm725_vm2 = vmor %vm723_vm1, %vm724_vm14 }
 0xc2a   :  { %v720_v12 = vsub.f32 1.0, %v719_v10 }
 0xc2b   :  { %v784_v11 = vmul.f32 %v1917_v6, %v783_v9 }
 0xc2c   :  { %v721_v15 = vmul.f32 %v1919_v8, %v720_v12 }
 0xc2d   :  { %v785_v13 = vadd.f32 %v1917_v6, %v784_v11 }
 0xc2e   :  { %v722_v19 = vadd.f32 %v1919_v8, %v721_v15 }
 0xc2f   :  { %v789_v17 = vsel %vm788_vm13, %v1917_v6, %v785_v13 }
 0xc30   :  { %v794_v21 = vsel %vm791_vm15, %v793_v18, %v789_v17  ;;  %v726_v26 = vsel %vm725_vm2, %v1919_v8, %v722_v19 }
 0xc31   :  { %v731_v38 = vsel %vm728_vm3, %v730_v27, %v726_v26  ;;  %v800_v42 = vmul.f32 %v798_v40, %v794_v21 }
 0xc32   :  { %v734_v24 = vmul.f32 %v731_v38, %v2325_v51 }
 0xc8a   :  { %v803_v22 = vpop.permute.xlu0 %802 }
 0xc8b   :  { %v805_v25 = vmul.f32 %v803_v22, %v794_v21 }
 0xc8d   :  { %807 = vrot.lane.b32.xlu2 %v805_v25, %s2043_s22 }
 0xc8f   :  { %v737_v37 = vpop.permute.xlu1 %736 }
 0xc90   :  { %v739_v28 = vmul.f32 %v737_v37, %v731_v38 }
 0xc92   :  { %741 = vrot.lane.b32.xlu0 %v739_v28, %s2043_s22 }
 0xce7   :  { %v808_v43 = vpop.permute.xlu2 %807 }
 0xce8   :  { %v2354_v46 = vadd.f32 %v808_v43, %v800_v42 }
 0xcea   :  { %1920 = vtanh.f32 %v2354_v46  ;;  %v938_v43 = vrot.slane %v2354_v46, 6 }
 0xcf0   :  { %v1921_v47 = vpop.eup %1920 }
 0xcf1   :  { %813 = vrot.lane.b32.xlu1 %v1921_v47, %s2042_s21 }
 0xd04   :  { %v742_v48 = vpop.permute.xlu0 %741 }
 0xd05   :  { %v2359_v29 = vadd.f32 %v742_v48, %v734_v24 }
 0xd07   :  { %1922 = vtanh.f32 %v2359_v29 }
 0xd0d   :  { %v1923_v50 = vpop.eup %1922 }
 0xd0e   :  { %747 = vrot.lane.b32.xlu2 %v1923_v50, %s2042_s21 }
 0xd63   :  { %v814_v53 = vpop.permute.xlu1 %813 }
 0xd64   :  { %v816_v41 = vmul.f32 %v814_v53, %v794_v21 }
 0xd66   :  { %v888_v54 = vrot.slane %v816_v41, 2  ;;  %818 = vrot.lane.b32.xlu1 %v816_v41, %s2043_s22 }
 0xd68   :  { %889 = vrot.lane.b32.xlu0 %v888_v54, %s2043_s22  ;;  %v748_v55 = vpop.permute.xlu2 %747 }
 0xd69   :  { %v750_v56 = vmul.f32 %v748_v55, %v731_v38 }
 0xd6b   :  { %v822_v57 = vrot.slane %v750_v56, 6 }
 0xd6d   :  { %823 = vrot.lane.b32.xlu2 %v822_v57, %s2042_s21 }
 0xdc7   :  { %v824_v51 = vpop.permute.xlu2 %823 }
 0xdd8   :  { %v819_v52 = vpop.permute.xlu1 %818 }
 0xdd9   :  { %v826_v58 = vsel %vm71_vm5, %v819_v52, %v824_v51 }
 0xdda   :  { %v828_v44 = vrot.slane %v826_v58, 2  ;;  %v890_v0 = vpop.permute.xlu0 %889 }
 0xddb   :  { %1805 = vmatmul.msk.f32.vlgmr.msrb.gmra.mxu3 %vm71_vm5, %v890_v0 }
 0xddc   :  { %1803 = vmatmul.msk.f32.vlgmr.msrb.gmra.mxu1 %vm138_vm6, %v828_v44  ;;  %1400 = vmatpush.msrb.mxu3 %v2372_v1 }
 0xdde   :  { %1401 = vmatpush.msrb.mxu3 %v2378_v2 }
 0xde0   :  { %1402 = vmatpush.msrb.mxu3 %v2384_v49 }
 0xde2   :  { %1403 = vmatpush.msrb.mxu3 %v2390_v59 }
 0xde4   :  { %1404 = vmatpush.msrb.mxu3 %v2396_v61 }
 0xde6   :  { %1405 = vmatpush.msrb.mxu3 %v2402_v62 }
 0xde8   :  { %1406 = vmatpush.msrb.mxu3 %v2408_v30 }
 0xdea   :  { %1407 = vmatpush.msrb.mxu3 %v2168_v39 }
 0xe59   :  { %v848_v31 = vpop.f32.mrf.mxu1 }
 0xe5a   :  { %v849_v32 = vadd.f32 %v2208_v45, %v848_v31 }
 0xe5c   :  { %1924 = vtanh.f32 %v849_v32  ;;  %v1804_v3 = vmul.f32 -1.442695, %v849_v32 }
 0xe5e   :  { %v910_v33 = vpop.f32.mrf.mxu3 }
 0xe5f   :  { %v914_v34 = vrot.slane %v910_v33, 4  ;;  %v2444_v33 = vld [vmem:[%s2638_s1 + $0x50] sm:$0xff] }
 0xe61   :  { %v916_v35 = vadd.f32 %v914_v34, %v2285_v5 }
 0xe62   :  { %v1925_v36 = vpop.eup %1924 }
 0xe63   :  { %1926 = vtanh.f32 %v916_v35  ;;  %873 = vrot.lane.b32.xlu1 %v1925_v36, %s2042_s21  ;;  %v1806_v4 = vmul.f32 -1.442695, %v916_v35  ;;  %v2450_v35 = vld [vmem:[%s2638_s1 + $0x8] ss:$0 sm:$0xff] }
 0xe64   :  { %1928 = vpow2.f32 %v1804_v3 }
 0xe65   :  { %1930 = vpow2.f32 %v1806_v4 }
 0xe69   :  { %v1927_v63 = vpop.eup %1926 }
 0xe6a   :  { %942 = vrot.lane.b32.xlu0 %v1927_v63, %s2042_s21  ;;  %v1929_v6 = vpop.eup %1928 }
 0xe6b   :  { %v854_v39 = vadd.f32 1.0, %v1929_v6  ;;  %v1931_v7 = vpop.eup %1930 }
 0xe6c   :  { %v920_v45 = vadd.f32 1.0, %v1931_v7 }
 0xe6d   :  { %1932 = vrcp.f32 %v854_v39  ;;  %v866_v16 = vand.u32 2147483648, %v854_v39  ;;  %vm860_vm7 = vweird.f32 %v854_v39  ;;  %v864_v17 = vand.u32 2147483647, %v854_v39 }
 0xe6e   :  { %1934 = vrcp.f32 %v920_v45  ;;  %v932_v26 = vand.u32 2147483648, %v920_v45  ;;  %vm926_vm10 = vweird.f32 %v920_v45  ;;  %v930_v27 = vand.u32 2147483647, %v920_v45 }
 0xe6f   :  { %v867_v20 = vor.u32 1.1754944e-38, %v866_v16  ;;  %vm865_vm9 = vcmp.eq.f32.partialorder %v864_v17, 8.507059e+37 }
 0xe70   :  { %v933_v38 = vor.u32 1.1754944e-38, %v932_v26  ;;  %vm931_vm12 = vcmp.eq.f32.partialorder %v930_v27, 8.507059e+37 }
 0xe73   :  { %v1933_v8 = vpop.eup %1932 }
 0xe74   :  { %v856_v9 = vmul.f32 %v1933_v8, %v854_v39  ;;  %v1935_v10 = vpop.eup %1934  ;;  %vm861_vm4 = vweird.f32 %v1933_v8 }
 0xe75   :  { %v922_v12 = vmul.f32 %v1935_v10, %v920_v45  ;;  %vm862_vm8 = vmor %vm860_vm7, %vm861_vm4  ;;  %vm927_vm0 = vweird.f32 %v1935_v10 }
 0xe76   :  { %v857_v11 = vsub.f32 1.0, %v856_v9  ;;  %vm928_vm11 = vmor %vm926_vm10, %vm927_vm0 }
 0xe77   :  { %v923_v14 = vsub.f32 1.0, %v922_v12 }
 0xe78   :  { %v858_v13 = vmul.f32 %v1933_v8, %v857_v11 }
 0xe79   :  { %v924_v18 = vmul.f32 %v1935_v10, %v923_v14 }
 0xe7a   :  { %v859_v15 = vadd.f32 %v1933_v8, %v858_v13 }
 0xe7b   :  { %v925_v23 = vadd.f32 %v1935_v10, %v924_v18 }
 0xe7c   :  { %v863_v19 = vsel %vm862_vm8, %v1933_v8, %v859_v15 }
 0xe7d   :  { %v868_v22 = vsel %vm865_vm9, %v867_v20, %v863_v19  ;;  %v929_v37 = vsel %vm928_vm11, %v1935_v10, %v925_v23 }
 0xe7e   :  { %v934_v40 = vsel %vm931_vm12, %v933_v38, %v929_v37  ;;  %v871_v53 = vmul.f32 %v868_v22, %v2359_v29 }
 0xe7f   :  { %v940_v47 = vmul.f32 %v938_v43, %v934_v40 }
 0xed5   :  { %v874_v21 = vpop.permute.xlu1 %873 }
 0xed6   :  { %v876_v25 = vmul.f32 %v874_v21, %v868_v22 }
 0xed8   :  { %878 = vrot.lane.b32.xlu0 %v876_v25, %s2043_s22 }
 0xedc   :  { %v943_v28 = vpop.permute.xlu0 %942 }
 0xedd   :  { %v945_v42 = vmul.f32 %v943_v28, %v934_v40 }
 0xedf   :  { %947 = vrot.lane.b32.xlu2 %v945_v42, %s2043_s22 }
 0xf39   :  { %v948_v24 = vpop.permute.xlu2 %947 }
 0xf3a   :  { %v2419_v48 = vadd.f32 %v948_v24, %v940_v47 }
 0xf3c   :  { %1936 = vtanh.f32 %v2419_v48 }
 0xf42   :  { %v1937_v50 = vpop.eup %1936 }
 0xf43   :  { %953 = vrot.lane.b32.xlu1 %v1937_v50, %s2042_s21 }
 0xf4a   :  { %v879_v41 = vpop.permute.xlu0 %878 }
 0xf4b   :  { %v2424_v54 = vadd.f32 %v879_v41, %v871_v53 }
 0xf4d   :  { %1938 = vtanh.f32 %v2424_v54 }
 0xf53   :  { %v1939_v55 = vpop.eup %1938 }
 0xf54   :  { %884 = vrot.lane.b32.xlu2 %v1939_v55, %s2042_s21 }
 0xfae   :  { %v885_v46 = vpop.permute.xlu2 %884 }
 0xfaf   :  { %v887_v56 = vmul.f32 %v885_v46, %v868_v22  ;;  %v1078_v46 = vrot.slane %v2419_v48, 6 }
 0xfb1   :  { %v962_v57 = vrot.slane %v887_v56, 4 }
 0xfb3   :  { %963 = vrot.lane.b32.xlu2 %v962_v57, %s2042_s21 }
 0xfb5   :  { %v954_v51 = vpop.permute.xlu1 %953 }
 0xfb6   :  { %v956_v52 = vmul.f32 %v954_v51, %v934_v40 }
 0xfb8   :  { %v1028_v58 = vrot.slane %v956_v52, 4  ;;  %958 = vrot.lane.b32.xlu1 %v956_v52, %s2043_s22 }
 0xfba   :  { %1029 = vrot.lane.b32.xlu0 %v1028_v58, %s2043_s22 }
0x100d   :  { %v964_v29 = vpop.permute.xlu2 %963 }
0x102a   :  { %v959_v44 = vpop.permute.xlu1 %958 }
0x102b   :  { %v966_v0 = vsel %vm71_vm5, %v959_v44, %v964_v29 }
0x102c   :  { %v968_v31 = vrot.slane %v966_v0, 4  ;;  %v1030_v32 = vpop.permute.xlu0 %1029 }
0x102d   :  { %1809 = vmatmul.msk.f32.vlgmr.msrb.gmra.mxu2 %vm71_vm5, %v1030_v32 }
0x102e   :  { %1807 = vmatmul.msk.f32.vlgmr.msrb.gmra.mxu0 %vm138_vm6, %v968_v31  ;;  %1544 = vmatpush.msrb.mxu2 %v2372_v1 }
0x1030   :  { %1545 = vmatpush.msrb.mxu2 %v2378_v2 }
0x1032   :  { %1546 = vmatpush.msrb.mxu2 %v2384_v49 }
0x1034   :  { %1547 = vmatpush.msrb.mxu2 %v2390_v59 }
0x1036   :  { %1548 = vmatpush.msrb.mxu2 %v2396_v61 }
0x1038   :  { %1549 = vmatpush.msrb.mxu2 %v2402_v62 }
0x103a   :  { %1550 = vmatpush.msrb.mxu2 %v2408_v30 }
0x103c   :  { %1551 = vmatpush.msrb.mxu2 %v2444_v33 }
0x10ab   :  { %v988_v34 = vpop.f32.mrf.mxu0 }
0x10ac   :  { %v989_v36 = vadd.f32 %v2450_v35, %v988_v34 }
0x10ae   :  { %1940 = vtanh.f32 %v989_v36  ;;  %v1808_v7 = vmul.f32 -1.442695, %v989_v36 }
0x10b0   :  { %v1050_v63 = vpop.f32.mrf.mxu2 }
0x10b1   :  { %v1054_v3 = vrot.slane %v1050_v63, 2 }
0x10b3   :  { %v1056_v4 = vadd.f32 %v1054_v3, %v2285_v5 }
0x10b4   :  { %v1941_v6 = vpop.eup %1940 }
0x10b5   :  { %1942 = vtanh.f32 %v1056_v4  ;;  %1013 = vrot.lane.b32.xlu0 %v1941_v6, %s2042_s21  ;;  %v1810_v45 = vmul.f32 -1.442695, %v1056_v4 }
0x10b6   :  { %1944 = vpow2.f32 %v1808_v7 }
0x10b7   :  { %1946 = vpow2.f32 %v1810_v45 }
0x10bb   :  { %v1943_v39 = vpop.eup %1942 }
0x10bc   :  { %1082 = vrot.lane.b32.xlu1 %v1943_v39, %s2042_s21  ;;  %v1945_v8 = vpop.eup %1944 }
0x10bd   :  { %v994_v9 = vadd.f32 1.0, %v1945_v8  ;;  %v1947_v10 = vpop.eup %1946 }
0x10be   :  { %v1060_v11 = vadd.f32 1.0, %v1947_v10 }
0x10bf   :  { %1948 = vrcp.f32 %v994_v9  ;;  %v1006_v19 = vand.u32 2147483648, %v994_v9  ;;  %vm1000_vm14 = vweird.f32 %v994_v9  ;;  %v1004_v20 = vand.u32 2147483647, %v994_v9 }
0x10c0   :  { %1950 = vrcp.f32 %v1060_v11  ;;  %v1072_v38 = vand.u32 2147483648, %v1060_v11  ;;  %vm1066_vm3 = vweird.f32 %v1060_v11  ;;  %v1070_v28 = vand.u32 2147483647, %v1060_v11 }
0x10c1   :  { %v1007_v23 = vor.u32 1.1754944e-38, %v1006_v19  ;;  %vm1005_vm1 = vcmp.eq.f32.partialorder %v1004_v20, 8.507059e+37  ;;  %v2039_v19 = vld [vmem:[%s2638_s1 + $0x18] sm:$0xff]  ;;  %v2040_v20 = vld [vmem:[%s2638_s1 + $0x10] sm:$0xff] }
0x10c2   :  { %v1073_v42 = vor.u32 1.1754944e-38, %v1072_v38  ;;  %vm1071_vm7 = vcmp.eq.f32.partialorder %v1070_v28, 8.507059e+37 }
0x10c5   :  { %v1949_v12 = vpop.eup %1948 }
0x10c6   :  { %v996_v13 = vmul.f32 %v1949_v12, %v994_v9  ;;  %v1951_v5 = vpop.eup %1950  ;;  %vm1001_vm13 = vweird.f32 %v1949_v12 }
0x10c7   :  { %v1062_v15 = vmul.f32 %v1951_v5, %v1060_v11  ;;  %vm1002_vm15 = vmor %vm1000_vm14, %vm1001_vm13  ;;  %vm1067_vm2 = vweird.f32 %v1951_v5 }
0x10c8   :  { %v997_v14 = vsub.f32 1.0, %v996_v13  ;;  %vm1068_vm4 = vmor %vm1066_vm3, %vm1067_vm2 }
0x10c9   :  { %v1063_v17 = vsub.f32 1.0, %v1062_v15  ;;  %v60_v15 = vld [vmem:[%s2638_s1 + $0x38] sm:$0xff] }
0x10ca   :  { %v998_v16 = vmul.f32 %v1949_v12, %v997_v14  ;;  %v61_v14 = vld [vmem:[%s2638_s1 + $0x40] sm:$0xff] }
0x10cb   :  { %v1064_v21 = vmul.f32 %v1951_v5, %v1063_v17  ;;  %v2037_v17 = vld [vmem:[%s2638_s1 + $0x28] sm:$0xff] }
0x10cc   :  { %v999_v18 = vadd.f32 %v1949_v12, %v998_v16  ;;  %v59_v16 = vld [vmem:[%s2638_s1 + $0x30] sm:$0xff] }
0x10cd   :  { %v1065_v27 = vadd.f32 %v1951_v5, %v1064_v21 }
0x10ce   :  { %v1003_v22 = vsel %vm1002_vm15, %v1949_v12, %v999_v18  ;;  %v2038_v18 = vld [vmem:[%s2638_s1 + $0x20] sm:$0xff] }
0x10cf   :  { %v1008_v25 = vsel %vm1005_vm1, %v1007_v23, %v1003_v22  ;;  %v1069_v40 = vsel %vm1068_vm4, %v1951_v5, %v1065_v27  ;;  %v62_v5 = vld [vmem:[%s2638_s1 + $0x48] sm:$0xff] }
0x10d0   :  { %v1074_v47 = vsel %vm1071_vm7, %v1073_v42, %v1069_v40  ;;  %v1011_v50 = vmul.f32 %v1008_v25, %v2424_v54  ;;  %1186 = vmatpush.msra.mxu1 %v62_v5  ;;  %1323 = vmatpush.msra.mxu0 %v62_v5 }
0x10d1   :  { %v1080_v56 = vmul.f32 %v1078_v46, %v1074_v47 }
0x10d2   :  { %1187 = vmatpush.msra.mxu1 %v61_v14  ;;  %1324 = vmatpush.msra.mxu0 %v61_v14 }
0x10d4   :  { %1188 = vmatpush.msra.mxu1 %v60_v15  ;;  %1325 = vmatpush.msra.mxu0 %v60_v15 }
0x10d6   :  { %1189 = vmatpush.msra.mxu1 %v59_v16  ;;  %1326 = vmatpush.msra.mxu0 %v59_v16 }
0x10d8   :  { %1190 = vmatpush.msra.mxu1 %v2037_v17  ;;  %1327 = vmatpush.msra.mxu0 %v2037_v17 }
0x10da   :  { %1191 = vmatpush.msra.mxu1 %v2038_v18  ;;  %1328 = vmatpush.msra.mxu0 %v2038_v18 }
0x10dc   :  { %1192 = vmatpush.msra.mxu1 %v2039_v19  ;;  %1329 = vmatpush.msra.mxu0 %v2039_v19 }
0x10de   :  { %1193 = vmatpush.msra.mxu1 %v2040_v20  ;;  %1330 = vmatpush.msra.mxu0 %v2040_v20 }
0x10e0   :  { %1467 = vmatpush.msrb.mxu1 %v62_v5  ;;  %1611 = vmatpush.msrb.mxu0 %v62_v5 }
0x10e2   :  { %1468 = vmatpush.msrb.mxu1 %v61_v14  ;;  %1612 = vmatpush.msrb.mxu0 %v61_v14 }
0x10e4   :  { %1469 = vmatpush.msrb.mxu1 %v60_v15  ;;  %1613 = vmatpush.msrb.mxu0 %v60_v15 }
0x10e6   :  { %1470 = vmatpush.msrb.mxu1 %v59_v16  ;;  %1614 = vmatpush.msrb.mxu0 %v59_v16 }
0x10e8   :  { %1471 = vmatpush.msrb.mxu1 %v2037_v17  ;;  %1615 = vmatpush.msrb.mxu0 %v2037_v17 }
0x10ea   :  { %1472 = vmatpush.msrb.mxu1 %v2038_v18  ;;  %1616 = vmatpush.msrb.mxu0 %v2038_v18 }
0x10ec   :  { %1473 = vmatpush.msrb.mxu1 %v2039_v19  ;;  %1617 = vmatpush.msrb.mxu0 %v2039_v19 }
0x10ee   :  { %1474 = vmatpush.msrb.mxu1 %v2040_v20  ;;  %1618 = vmatpush.msrb.mxu0 %v2040_v20 }
0x1127   :  { %v1014_v26 = vpop.permute.xlu0 %1013 }
0x1128   :  { %v1016_v37 = vmul.f32 %v1014_v26, %v1008_v25 }
0x112a   :  { %1018 = vrot.lane.b32.xlu2 %v1016_v37, %s2043_s22 }
0x112e   :  { %v1083_v43 = vpop.permute.xlu1 %1082 }
0x112f   :  { %v1085_v24 = vmul.f32 %v1083_v43, %v1074_v47 }
0x1131   :  { %1087 = vrot.lane.b32.xlu0 %v1085_v24, %s2043_s22 }
0x1184   :  { %v1019_v53 = vpop.permute.xlu2 %1018 }
0x1185   :  { %v1021_v41 = vadd.f32 %v1019_v53, %v1011_v50 }
0x1187   :  { %1952 = vtanh.f32 %v1021_v41 }
0x118d   :  { %v1953_v55 = vpop.eup %1952 }
0x118e   :  { %1024 = vrot.lane.b32.xlu1 %v1953_v55, %s2042_s21 }
0x11a3   :  { %v1088_v57 = vpop.permute.xlu0 %1087 }
0x11a4   :  { %v2461_v51 = vadd.f32 %v1088_v57, %v1080_v56 }
0x11a6   :  { %1954 = vtanh.f32 %v2461_v51 }
0x11ac   :  { %v1955_v52 = vpop.eup %1954 }
0x11ad   :  { %1093 = vrot.lane.b32.xlu2 %v1955_v52, %s2042_s21 }
0x1200   :  { %v1025_v58 = vpop.permute.xlu1 %1024 }
0x1201   :  { %v1027_v29 = vmul.f32 %v1025_v58, %v1008_v25 }
0x1203   :  { %v1102_v54 = vrot.slane %v1027_v29, 2 }
0x1205   :  { %1103 = vrot.lane.b32.xlu1 %v1102_v54, %s2042_s21  ;;  %v1220_v54 = vrot.slane %v2461_v51, 6 }
0x1207   :  { %v1094_v44 = vpop.permute.xlu2 %1093 }
0x1208   :  { %v1096_v0 = vmul.f32 %v1094_v44, %v1074_v47 }
0x120a   :  { %1098 = vrot.lane.b32.xlu0 %v1096_v0, %s2043_s22 }
0x1277   :  { %v1104_v31 = vpop.permute.xlu1 %1103 }
0x127c   :  { %v2467_v48 = vpop.permute.xlu0 %1098 }
0x127d   :  { %v1106_v32 = vsel %vm71_vm5, %v2467_v48, %v1104_v31 }
0x127e   :  { %v1108_v34 = vrot.slane %v1106_v32, 6 }
0x1280   :  { %1811 = vmatmul.msk.f32.vlgmr.msra.gmra.mxu3 %vm138_vm6, %v1108_v34 }
0x1281   :  { %1688 = vmatpush.msra.mxu3 %v2372_v1 }
0x1283   :  { %1689 = vmatpush.msra.mxu3 %v2378_v2 }
0x1285   :  { %1690 = vmatpush.msra.mxu3 %v2384_v49 }
0x1287   :  { %1691 = vmatpush.msra.mxu3 %v2390_v59 }
0x1289   :  { %1692 = vmatpush.msra.mxu3 %v2396_v61 }
0x128b   :  { %1693 = vmatpush.msra.mxu3 %v2402_v62 }
0x128d   :  { %1694 = vmatpush.msra.mxu3 %v2408_v30 }
0x128f   :  { %1695 = vmatpush.msra.mxu3 %v2444_v33 }
0x1303   :  { %v1128_v36 = vpop.f32.mrf.mxu3 }
0x1304   :  { %v1129_v63 = vadd.f32 %v2450_v35, %v1128_v36 }
0x1306   :  { %1956 = vtanh.f32 %v1129_v63  ;;  %v1812_v1 = vmul.f32 -1.442695, %v1129_v63 }
0x1308   :  { %1958 = vpow2.f32 %v1812_v1 }
0x130c   :  { %v1957_v3 = vpop.eup %1956 }
0x130d   :  { %1153 = vrot.lane.b32.xlu2 %v1957_v3, %s2042_s21 }
0x130e   :  { %v1959_v2 = vpop.eup %1958 }
0x130f   :  { %v1134_v49 = vadd.f32 1.0, %v1959_v2 }
0x1311   :  { %1960 = vrcp.f32 %v1134_v49  ;;  %v1146_v30 = vand.u32 2147483648, %v1134_v49  ;;  %vm1140_vm9 = vweird.f32 %v1134_v49  ;;  %v1144_v33 = vand.u32 2147483647, %v1134_v49 }
0x1313   :  { %v1147_v7 = vor.u32 1.1754944e-38, %v1146_v30  ;;  %vm1145_vm10 = vcmp.eq.f32.partialorder %v1144_v33, 8.507059e+37 }
0x1317   :  { %v1961_v59 = vpop.eup %1960 }
0x1318   :  { %v1136_v61 = vmul.f32 %v1961_v59, %v1134_v49  ;;  %vm1141_vm8 = vweird.f32 %v1961_v59 }
0x1319   :  { %vm1142_vm0 = vmor %vm1140_vm9, %vm1141_vm8 }
0x131a   :  { %v1137_v4 = vsub.f32 1.0, %v1136_v61 }
0x131c   :  { %v1138_v62 = vmul.f32 %v1961_v59, %v1137_v4 }
0x131e   :  { %v1139_v6 = vadd.f32 %v1961_v59, %v1138_v62 }
0x1320   :  { %v1143_v39 = vsel %vm1142_vm0, %v1961_v59, %v1139_v6 }
0x1321   :  { %v1148_v8 = vsel %vm1145_vm10, %v1147_v7, %v1143_v39 }
0x1322   :  { %v1151_v10 = vmul.f32 %v1148_v8, %v1021_v41 }
0x1367   :  { %v1154_v45 = vpop.permute.xlu2 %1153 }
0x1368   :  { %v1156_v9 = vmul.f32 %v1154_v45, %v1148_v8 }
0x136a   :  { %1158 = vrot.lane.b32.xlu0 %v1156_v9, %s2043_s22 }
0x13dc   :  { %v1159_v11 = vpop.permute.xlu0 %1158 }
0x13dd   :  { %v2483_v12 = vadd.f32 %v1159_v11, %v1151_v10 }
0x13df   :  { %1962 = vtanh.f32 %v2483_v12 }
0x13e5   :  { %v1963_v13 = vpop.eup %1962 }
0x13e6   :  { %1164 = vrot.lane.b32.xlu1 %v1963_v13, %s2042_s21 }
0x1458   :  { %v1165_v21 = vpop.permute.xlu1 %1164 }
0x1459   :  { %v2511_v22 = vmul.f32 %v1165_v21, %v1148_v8 }
0x145b   :  { %v1169_v23 = vrot.slane %v2511_v22, 2 }
0x145d   :  { %1170 = vrot.lane.b32.xlu2 %v1169_v23, %s2042_s21 }
0x14b7   :  { %v1171_v25 = vpop.permute.xlu2 %1170 }
0x14b8   :  { %v1173_v26 = vsel %vm71_vm5, %v2467_v48, %v1171_v25 }
0x14b9   :  { %v1175_v27 = vrot.slane %v1173_v26, 6 }
0x14bb   :  { %1813 = vmatmul.msk.f32.vlgmr.msra.gmra.mxu1 %vm138_vm6, %v1175_v27 }
0x1538   :  { %v1195_v37 = vpop.f32.mrf.mxu1 }
0x1539   :  { %v1198_v38 = vadd.f32 %v1195_v37, %v2288_v60 }
0x153b   :  { %1964 = vtanh.f32 %v1198_v38  ;;  %v1814_v40 = vmul.f32 -1.442695, %v1198_v38 }
0x153d   :  { %1966 = vpow2.f32 %v1814_v40 }
0x1541   :  { %v1965_v28 = vpop.eup %1964 }
0x1542   :  { %1224 = vrot.lane.b32.xlu0 %v1965_v28, %s2042_s21 }
0x1543   :  { %v1967_v42 = vpop.eup %1966 }
0x1544   :  { %v1202_v43 = vadd.f32 1.0, %v1967_v42 }
0x1546   :  { %1968 = vrcp.f32 %v1202_v43  ;;  %v1214_v55 = vand.u32 2147483648, %v1202_v43  ;;  %vm1208_vm12 = vweird.f32 %v1202_v43  ;;  %v1212_v46 = vand.u32 2147483647, %v1202_v43 }
0x1548   :  { %v1215_v57 = vor.u32 1.1754944e-38, %v1214_v55  ;;  %vm1213_vm14 = vcmp.eq.f32.partialorder %v1212_v46, 8.507059e+37 }
0x154c   :  { %v1969_v47 = vpop.eup %1968 }
0x154d   :  { %v1204_v24 = vmul.f32 %v1969_v47, %v1202_v43  ;;  %vm1209_vm11 = vweird.f32 %v1969_v47 }
0x154e   :  { %vm1210_vm13 = vmor %vm1208_vm12, %vm1209_vm11 }
0x154f   :  { %v1205_v50 = vsub.f32 1.0, %v1204_v24 }
0x1551   :  { %v1206_v53 = vmul.f32 %v1969_v47, %v1205_v50 }
0x1553   :  { %v1207_v41 = vadd.f32 %v1969_v47, %v1206_v53 }
0x1555   :  { %v1211_v56 = vsel %vm1210_vm13, %v1969_v47, %v1207_v41 }
0x1556   :  { %v1216_v58 = vsel %vm1213_vm14, %v1215_v57, %v1211_v56 }
0x1557   :  { %v1222_v44 = vmul.f32 %v1220_v54, %v1216_v58 }
0x15b4   :  { %v1225_v52 = vpop.permute.xlu0 %1224 }
0x15b5   :  { %v1227_v29 = vmul.f32 %v1225_v52, %v1216_v58 }
0x15b7   :  { %1229 = vrot.lane.b32.xlu1 %v1227_v29, %s2043_s22 }
0x15bf   :  { %1243 = vrot.lane.b32.xlu1 %v2511_v22, %s2042_s21 }
0x1629   :  { %v1230_v0 = vpop.permute.xlu1 %1229 }
0x162a   :  { %v2524_v31 = vadd.f32 %v1230_v0, %v1222_v44 }
0x162c   :  { %1970 = vtanh.f32 %v2524_v31  ;;  %v1360_v56 = vrot.slane %v2524_v31, 6 }
0x1631   :  { %v1244_v36 = vpop.permute.xlu1 %1243 }
0x1632   :  { %v1971_v48 = vpop.eup %1970 }
0x1633   :  { %1235 = vrot.lane.b32.xlu2 %v1971_v48, %s2042_s21 }
0x168d   :  { %v1236_v32 = vpop.permute.xlu2 %1235 }
0x168e   :  { %v1238_v34 = vmul.f32 %v1236_v32, %v1216_v58 }
0x1690   :  { %1240 = vrot.lane.b32.xlu0 %v1238_v34, %s2043_s22 }
0x1702   :  { %v1241_v63 = vpop.permute.xlu0 %1240 }
0x1703   :  { %v1246_v3 = vsel %vm71_vm5, %v1241_v63, %v1244_v36 }
0x1704   :  { %1815 = vmatmul.msk.f32.vlgmr.msra.gmra.mxu2 %vm138_vm6, %v1246_v3 }
0x1787   :  { %v1267_v51 = vpop.f32.mrf.mxu2 }
0x1788   :  { %v1268_v1 = vadd.f32 %v2450_v35, %v1267_v51 }
0x178a   :  { %1972 = vtanh.f32 %v1268_v1  ;;  %v1816_v49 = vmul.f32 -1.442695, %v1268_v1 }
0x178c   :  { %1974 = vpow2.f32 %v1816_v49 }
0x1790   :  { %v1973_v2 = vpop.eup %1972 }
0x1791   :  { %1292 = vrot.lane.b32.xlu2 %v1973_v2, %s2042_s21 }
0x1792   :  { %v1975_v59 = vpop.eup %1974 }
0x1793   :  { %v1273_v61 = vadd.f32 1.0, %v1975_v59 }
0x1795   :  { %1976 = vrcp.f32 %v1273_v61  ;;  %v1285_v39 = vand.u32 2147483648, %v1273_v61  ;;  %vm1279_vm1 = vweird.f32 %v1273_v61  ;;  %v1283_v7 = vand.u32 2147483647, %v1273_v61 }
0x1797   :  { %v1286_v8 = vor.u32 1.1754944e-38, %v1285_v39  ;;  %vm1284_vm3 = vcmp.eq.f32.partialorder %v1283_v7, 8.507059e+37 }
0x179b   :  { %v1977_v4 = vpop.eup %1976 }
0x179c   :  { %v1275_v62 = vmul.f32 %v1977_v4, %v1273_v61  ;;  %vm1280_vm15 = vweird.f32 %v1977_v4 }
0x179d   :  { %vm1281_vm2 = vmor %vm1279_vm1, %vm1280_vm15 }
0x179e   :  { %v1276_v6 = vsub.f32 1.0, %v1275_v62 }
0x17a0   :  { %v1277_v30 = vmul.f32 %v1977_v4, %v1276_v6 }
0x17a2   :  { %v1278_v33 = vadd.f32 %v1977_v4, %v1277_v30 }
0x17a4   :  { %v1282_v45 = vsel %vm1281_vm2, %v1977_v4, %v1278_v33 }
0x17a5   :  { %v1287_v10 = vsel %vm1284_vm3, %v1286_v8, %v1282_v45 }
0x17a6   :  { %v1290_v13 = vmul.f32 %v1287_v10, %v2483_v12 }
0x17eb   :  { %v1293_v9 = vpop.permute.xlu2 %1292 }
0x17ec   :  { %v1295_v11 = vmul.f32 %v1293_v9, %v1287_v10 }
0x17ee   :  { %1297 = vrot.lane.b32.xlu0 %v1295_v11, %s2043_s22 }
0x1860   :  { %v1298_v5 = vpop.permute.xlu0 %1297 }
0x1861   :  { %v2535_v14 = vadd.f32 %v1298_v5, %v1290_v13 }
0x1863   :  { %1978 = vtanh.f32 %v2535_v14 }
0x1869   :  { %v1979_v15 = vpop.eup %1978 }
0x186a   :  { %1303 = vrot.lane.b32.xlu1 %v1979_v15, %s2042_s21 }
0x18dc   :  { %v1304_v16 = vpop.permute.xlu1 %1303 }
0x18dd   :  { %v2539_v17 = vmul.f32 %v1304_v16, %v1287_v10 }
0x18df   :  { %1308 = vrot.lane.b32.xlu2 %v2539_v17, %s2042_s21  ;;  %v1383_v46 = vrot.slane %v2539_v17, 6 }
0x1939   :  { %v1309_v18 = vpop.permute.xlu2 %1308 }
0x193a   :  { %v1311_v19 = vsel %vm71_vm5, %v1241_v63, %v1309_v18 }
0x193b   :  { %1817 = vmatmul.msk.f32.vlgmr.msra.gmra.mxu0 %vm138_vm6, %v1311_v19 }
0x19b8   :  { %v1332_v12 = vpop.f32.mrf.mxu0 }
0x19b9   :  { %v1336_v20 = vrot.slane %v1332_v12, 6 }
0x19bb   :  { %v1338_v21 = vadd.f32 %v1336_v20, %v2288_v60 }
0x19bd   :  { %1980 = vtanh.f32 %v1338_v21  ;;  %v1818_v25 = vmul.f32 -1.442695, %v1338_v21 }
0x19bf   :  { %1982 = vpow2.f32 %v1818_v25 }
0x19c3   :  { %v1981_v23 = vpop.eup %1980 }
0x19c4   :  { %1364 = vrot.lane.b32.xlu0 %v1981_v23, %s2042_s21 }
0x19c5   :  { %v1983_v26 = vpop.eup %1982 }
0x19c6   :  { %v1342_v27 = vadd.f32 1.0, %v1983_v26 }
0x19c8   :  { %1984 = vrcp.f32 %v1342_v27  ;;  %v1354_v43 = vand.u32 2147483648, %v1342_v27  ;;  %vm1348_vm7 = vweird.f32 %v1342_v27  ;;  %v1352_v47 = vand.u32 2147483647, %v1342_v27 }
0x19ca   :  { %v1355_v50 = vor.u32 1.1754944e-38, %v1354_v43  ;;  %vm1353_vm9 = vcmp.eq.f32.partialorder %v1352_v47, 8.507059e+37 }
0x19ce   :  { %v1985_v37 = vpop.eup %1984 }
0x19cf   :  { %v1344_v38 = vmul.f32 %v1985_v37, %v1342_v27  ;;  %vm1349_vm4 = vweird.f32 %v1985_v37 }
0x19d0   :  { %vm1350_vm8 = vmor %vm1348_vm7, %vm1349_vm4 }
0x19d1   :  { %v1345_v28 = vsub.f32 1.0, %v1344_v38 }
0x19d3   :  { %v1346_v40 = vmul.f32 %v1985_v37, %v1345_v28 }
0x19d5   :  { %v1347_v42 = vadd.f32 %v1985_v37, %v1346_v40 }
0x19d7   :  { %v1351_v24 = vsel %vm1350_vm8, %v1985_v37, %v1347_v42 }
0x19d8   :  { %v1356_v41 = vsel %vm1353_vm9, %v1355_v50, %v1351_v24 }
0x19d9   :  { %v1362_v57 = vmul.f32 %v1360_v56, %v1356_v41 }
0x1a36   :  { %v1365_v53 = vpop.permute.xlu0 %1364 }
0x1a37   :  { %v1367_v55 = vmul.f32 %v1365_v53, %v1356_v41 }
0x1a39   :  { %1369 = vrot.lane.b32.xlu1 %v1367_v55, %s2043_s22 }
0x1a41   :  { %1384 = vrot.lane.b32.xlu1 %v1383_v46, %s2042_s21 }
0x1aab   :  { %v1370_v52 = vpop.permute.xlu1 %1369 }
0x1aac   :  { %v2553_v58 = vadd.f32 %v1370_v52, %v1362_v57 }
0x1aae   :  { %1986 = vtanh.f32 %v2553_v58  ;;  %v1504_v56 = vrot.slane %v2553_v58, 6 }
0x1ab3   :  { %v1385_v0 = vpop.permute.xlu1 %1384 }
0x1ab4   :  { %v1987_v29 = vpop.eup %1986 }
0x1ab5   :  { %1375 = vrot.lane.b32.xlu2 %v1987_v29, %s2042_s21 }
0x1b0f   :  { %v1376_v54 = vpop.permute.xlu2 %1375 }
0x1b10   :  { %v1378_v44 = vmul.f32 %v1376_v54, %v1356_v41 }
0x1b12   :  { %1380 = vrot.lane.b32.xlu0 %v1378_v44, %s2043_s22 }
0x1b84   :  { %v1381_v48 = vpop.permute.xlu0 %1380 }
0x1b85   :  { %v1387_v32 = vsel %vm71_vm5, %v1381_v48, %v1385_v0 }
0x1b86   :  { %v1389_v34 = vrot.slane %v1387_v32, 2 }
0x1b88   :  { %1819 = vmatmul.msk.f32.vlgmr.msrb.gmra.mxu3 %vm138_vm6, %v1389_v34 }
0x1c0b   :  { %v1409_v31 = vpop.f32.mrf.mxu3 }
0x1c0c   :  { %v1410_v36 = vadd.f32 %v2450_v35, %v1409_v31 }
0x1c0e   :  { %1988 = vtanh.f32 %v1410_v36  ;;  %v1820_v3 = vmul.f32 -1.442695, %v1410_v36 }
0x1c10   :  { %1990 = vpow2.f32 %v1820_v3 }
0x1c14   :  { %v1989_v63 = vpop.eup %1988 }
0x1c15   :  { %1434 = vrot.lane.b32.xlu2 %v1989_v63, %s2042_s21 }
0x1c16   :  { %v1991_v51 = vpop.eup %1990 }
0x1c17   :  { %v1415_v1 = vadd.f32 1.0, %v1991_v51 }
0x1c19   :  { %1992 = vrcp.f32 %v1415_v1  ;;  %v1427_v62 = vand.u32 2147483648, %v1415_v1  ;;  %vm1421_vm10 = vweird.f32 %v1415_v1  ;;  %v1425_v6 = vand.u32 2147483647, %v1415_v1 }
0x1c1b   :  { %v1428_v33 = vor.u32 1.1754944e-38, %v1427_v62  ;;  %vm1426_vm12 = vcmp.eq.f32.partialorder %v1425_v6, 8.507059e+37 }
0x1c1f   :  { %v1993_v2 = vpop.eup %1992 }
0x1c20   :  { %v1417_v49 = vmul.f32 %v1993_v2, %v1415_v1  ;;  %vm1422_vm0 = vweird.f32 %v1993_v2 }
0x1c21   :  { %vm1423_vm11 = vmor %vm1421_vm10, %vm1422_vm0 }
0x1c22   :  { %v1418_v59 = vsub.f32 1.0, %v1417_v49 }
0x1c24   :  { %v1419_v61 = vmul.f32 %v1993_v2, %v1418_v59 }
0x1c26   :  { %v1420_v4 = vadd.f32 %v1993_v2, %v1419_v61 }
0x1c28   :  { %v1424_v30 = vsel %vm1423_vm11, %v1993_v2, %v1420_v4 }
0x1c29   :  { %v1429_v7 = vsel %vm1426_vm12, %v1428_v33, %v1424_v30 }
0x1c2a   :  { %v1432_v8 = vmul.f32 %v1429_v7, %v2535_v14 }
0x1c6f   :  { %v1435_v39 = vpop.permute.xlu2 %1434 }
0x1c70   :  { %v1437_v45 = vmul.f32 %v1435_v39, %v1429_v7 }
0x1c72   :  { %1439 = vrot.lane.b32.xlu0 %v1437_v45, %s2043_s22 }
0x1ce4   :  { %v1440_v9 = vpop.permute.xlu0 %1439 }
0x1ce5   :  { %v2564_v10 = vadd.f32 %v1440_v9, %v1432_v8 }
0x1ce7   :  { %1994 = vtanh.f32 %v2564_v10 }
0x1ced   :  { %v1995_v11 = vpop.eup %1994 }
0x1cee   :  { %1445 = vrot.lane.b32.xlu1 %v1995_v11, %s2042_s21 }
0x1d60   :  { %v1446_v13 = vpop.permute.xlu1 %1445 }
0x1d61   :  { %v2568_v5 = vmul.f32 %v1446_v13, %v1429_v7 }
0x1d63   :  { %v1450_v15 = vrot.slane %v2568_v5, 6  ;;  %v1527_v55 = vrot.slane %v2568_v5, 4 }
0x1d65   :  { %1451 = vrot.lane.b32.xlu2 %v1450_v15, %s2042_s21 }
0x1dbf   :  { %v1452_v16 = vpop.permute.xlu2 %1451 }
0x1dc0   :  { %v1454_v18 = vsel %vm71_vm5, %v1381_v48, %v1452_v16 }
0x1dc1   :  { %v1456_v19 = vrot.slane %v1454_v18, 2 }
0x1dc3   :  { %1821 = vmatmul.msk.f32.vlgmr.msrb.gmra.mxu1 %vm138_vm6, %v1456_v19 }
0x1e40   :  { %v1476_v14 = vpop.f32.mrf.mxu1 }
0x1e41   :  { %v1480_v12 = vrot.slane %v1476_v14, 4 }
0x1e43   :  { %v1482_v20 = vadd.f32 %v1480_v12, %v2288_v60 }
0x1e45   :  { %1996 = vtanh.f32 %v1482_v20  ;;  %v1822_v23 = vmul.f32 -1.442695, %v1482_v20 }
0x1e47   :  { %1998 = vpow2.f32 %v1822_v23 }
0x1e4b   :  { %v1997_v21 = vpop.eup %1996 }
0x1e4c   :  { %1508 = vrot.lane.b32.xlu0 %v1997_v21, %s2042_s21 }
0x1e4d   :  { %v1999_v25 = vpop.eup %1998 }
0x1e4e   :  { %v1486_v26 = vadd.f32 1.0, %v1999_v25 }
0x1e50   :  { %2000 = vrcp.f32 %v1486_v26  ;;  %v1498_v42 = vand.u32 2147483648, %v1486_v26  ;;  %vm1492_vm14 = vweird.f32 %v1486_v26  ;;  %v1496_v43 = vand.u32 2147483647, %v1486_v26 }
0x1e52   :  { %v1499_v24 = vor.u32 1.1754944e-38, %v1498_v42  ;;  %vm1497_vm1 = vcmp.eq.f32.partialorder %v1496_v43, 8.507059e+37 }
0x1e56   :  { %v2001_v27 = vpop.eup %2000 }
0x1e57   :  { %v1488_v37 = vmul.f32 %v2001_v27, %v1486_v26  ;;  %vm1493_vm13 = vweird.f32 %v2001_v27 }
0x1e58   :  { %vm1494_vm15 = vmor %vm1492_vm14, %vm1493_vm13  ;;  %vm1740_vm14 = vcmask 1041408  }
0x1e59   :  { %v1489_v38 = vsub.f32 1.0, %v1488_v37 }
0x1e5b   :  { %v1490_v28 = vmul.f32 %v2001_v27, %v1489_v38 }
0x1e5d   :  { %v1491_v40 = vadd.f32 %v2001_v27, %v1490_v28 }
0x1e5f   :  { %v1495_v47 = vsel %vm1494_vm15, %v2001_v27, %v1491_v40  ;;  %vm1742_vm15 = vcmask 1043456  }
0x1e60   :  { %v1500_v53 = vsel %vm1497_vm1, %v1499_v24, %v1495_v47  ;;  %vm1744_vm1 = vcmask 1045504  }
0x1e61   :  { %v1506_v57 = vmul.f32 %v1504_v56, %v1500_v53 }
0x1ebe   :  { %v1509_v50 = vpop.permute.xlu0 %1508 }
0x1ebf   :  { %v1511_v41 = vmul.f32 %v1509_v50, %v1500_v53 }
0x1ec1   :  { %1513 = vrot.lane.b32.xlu1 %v1511_v41, %s2043_s22 }
0x1ec9   :  { %1528 = vrot.lane.b32.xlu1 %v1527_v55, %s2042_s21 }
0x1f33   :  { %v1514_v52 = vpop.permute.xlu1 %1513 }
0x1f34   :  { %v2582_v29 = vadd.f32 %v1514_v52, %v1506_v57 }
0x1f36   :  { %2002 = vtanh.f32 %v2582_v29  ;;  %v1648_v57 = vrot.slane %v2582_v29, 6 }
0x1f3b   :  { %v1529_v48 = vpop.permute.xlu1 %1528 }
0x1f3c   :  { %v2003_v54 = vpop.eup %2002 }
0x1f3d   :  { %1519 = vrot.lane.b32.xlu2 %v2003_v54, %s2042_s21 }
0x1f97   :  { %v1520_v44 = vpop.permute.xlu2 %1519 }
0x1f98   :  { %v1522_v0 = vmul.f32 %v1520_v44, %v1500_v53 }
0x1f9a   :  { %1524 = vrot.lane.b32.xlu0 %v1522_v0, %s2043_s22 }
0x200c   :  { %v1525_v32 = vpop.permute.xlu0 %1524 }
0x200d   :  { %v1531_v34 = vsel %vm71_vm5, %v1525_v32, %v1529_v48 }
0x200e   :  { %v1533_v31 = vrot.slane %v1531_v34, 4 }
0x2010   :  { %1823 = vmatmul.msk.f32.vlgmr.msrb.gmra.mxu2 %vm138_vm6, %v1533_v31 }
0x2093   :  { %v1553_v58 = vpop.f32.mrf.mxu2 }
0x2094   :  { %v1554_v36 = vadd.f32 %v2450_v35, %v1553_v58 }
0x2096   :  { %2004 = vtanh.f32 %v1554_v36  ;;  %v1824_v3 = vmul.f32 -1.442695, %v1554_v36 }
0x2098   :  { %2006 = vpow2.f32 %v1824_v3 }
0x209c   :  { %v2005_v63 = vpop.eup %2004 }
0x209d   :  { %1578 = vrot.lane.b32.xlu2 %v2005_v63, %s2042_s21 }
0x209e   :  { %v2007_v51 = vpop.eup %2006 }
0x209f   :  { %v1559_v1 = vadd.f32 1.0, %v2007_v51  ;;  %v1834_v51 = vld [vmem:[%s2638_s1 + $0x9] ss:$0 sm:$0xff] }
0x20a1   :  { %2008 = vrcp.f32 %v1559_v1  ;;  %v1571_v62 = vand.u32 2147483648, %v1559_v1  ;;  %vm1565_vm3 = vweird.f32 %v1559_v1  ;;  %v1569_v6 = vand.u32 2147483647, %v1559_v1 }
0x20a3   :  { %v1572_v33 = vor.u32 1.1754944e-38, %v1571_v62  ;;  %vm1570_vm7 = vcmp.eq.f32.partialorder %v1569_v6, 8.507059e+37 }
0x20a7   :  { %v2009_v2 = vpop.eup %2008 }
0x20a8   :  { %v1561_v49 = vmul.f32 %v2009_v2, %v1559_v1  ;;  %vm1566_vm2 = vweird.f32 %v2009_v2 }
0x20a9   :  { %vm1567_vm4 = vmor %vm1565_vm3, %vm1566_vm2  ;;  %vm1771_vm2 = vcmask 7168   ;;  %vm1773_vm3 = vcmask 1024  }
0x20aa   :  { %v1562_v59 = vsub.f32 1.0, %v1561_v49 }
0x20ac   :  { %v1563_v61 = vmul.f32 %v2009_v2, %v1562_v59 }
0x20ae   :  { %v1564_v4 = vadd.f32 %v2009_v2, %v1563_v61 }
0x20b0   :  { %v1568_v30 = vsel %vm1567_vm4, %v2009_v2, %v1564_v4 }
0x20b1   :  { %v1573_v7 = vsel %vm1570_vm7, %v1572_v33, %v1568_v30 }
0x20b2   :  { %v1576_v8 = vmul.f32 %v1573_v7, %v2564_v10 }
0x20f7   :  { %v1579_v39 = vpop.permute.xlu2 %1578 }
0x20f8   :  { %v1581_v45 = vmul.f32 %v1579_v39, %v1573_v7 }
0x20fa   :  { %1583 = vrot.lane.b32.xlu0 %v1581_v45, %s2043_s22 }
0x216c   :  { %v1584_v9 = vpop.permute.xlu0 %1583 }
0x216d   :  { %v2593_v11 = vadd.f32 %v1584_v9, %v1576_v8  ;;  %v1741_v9 = vsel %vm1740_vm14, %v2511_v22, %v1383_v46  ;;  %v1835_v22 = vld [vmem:[%s2638_s1 + $0xa] ss:$0 sm:$0xff] }
0x216f   :  { %2010 = vtanh.f32 %v2593_v11 }
0x2175   :  { %v2011_v13 = vpop.eup %2010 }
0x2176   :  { %1589 = vrot.lane.b32.xlu1 %v2011_v13, %s2042_s21  ;;  %v1743_v13 = vsel %vm1742_vm15, %v1741_v9, %v1527_v55 }
0x21e8   :  { %v1590_v15 = vpop.permute.xlu1 %1589 }
0x21e9   :  { %v2597_v16 = vmul.f32 %v1590_v15, %v1573_v7 }
0x21eb   :  { %v1594_v18 = vrot.slane %v2597_v16, 4  ;;  %v1671_v56 = vrot.slane %v2597_v16, 2 }
0x21ed   :  { %1595 = vrot.lane.b32.xlu2 %v1594_v18, %s2042_s21  ;;  %v1745_v16 = vsel %vm1744_vm1, %v1743_v13, %v1671_v56 }
0x2247   :  { %v1596_v19 = vpop.permute.xlu2 %1595 }
0x2248   :  { %v1598_v14 = vsel %vm71_vm5, %v1525_v32, %v1596_v19 }
0x2249   :  { %v1600_v12 = vrot.slane %v1598_v14, 4 }
0x224b   :  { %1825 = vmatmul.msk.f32.vlgmr.msrb.gmra.mxu0 %vm138_vm6, %v1600_v12 }
0x22c8   :  { %v1620_v10 = vpop.f32.mrf.mxu0 }
0x22c9   :  { %v1624_v20 = vrot.slane %v1620_v10, 2 }
0x22cb   :  { %v1626_v21 = vadd.f32 %v1624_v20, %v2288_v60 }
0x22cd   :  { %2012 = vtanh.f32 %v1626_v21  ;;  %v1826_v25 = vmul.f32 -1.442695, %v1626_v21 }
0x22cf   :  { %2014 = vpow2.f32 %v1826_v25 }
0x22d3   :  { %v2013_v23 = vpop.eup %2012 }
0x22d4   :  { %1652 = vrot.lane.b32.xlu0 %v2013_v23, %s2042_s21 }
0x22d5   :  { %v2015_v26 = vpop.eup %2014 }
0x22d6   :  { %v1630_v27 = vadd.f32 1.0, %v2015_v26 }
0x22d8   :  { %2016 = vrcp.f32 %v1630_v27  ;;  %v1642_v43 = vand.u32 2147483648, %v1630_v27  ;;  %vm1636_vm9 = vweird.f32 %v1630_v27  ;;  %v1640_v47 = vand.u32 2147483647, %v1630_v27 }
0x22da   :  { %v1643_v24 = vor.u32 1.1754944e-38, %v1642_v43  ;;  %vm1641_vm10 = vcmp.eq.f32.partialorder %v1640_v47, 8.507059e+37 }
0x22de   :  { %v2017_v37 = vpop.eup %2016 }
0x22df   :  { %v1632_v38 = vmul.f32 %v2017_v37, %v1630_v27  ;;  %vm1637_vm8 = vweird.f32 %v2017_v37 }
0x22e0   :  { %vm1638_vm0 = vmor %vm1636_vm9, %vm1637_vm8 }
0x22e1   :  { %v1633_v28 = vsub.f32 1.0, %v1632_v38 }
0x22e3   :  { %v1634_v40 = vmul.f32 %v2017_v37, %v1633_v28 }
0x22e5   :  { %v1635_v42 = vadd.f32 %v2017_v37, %v1634_v40 }
0x22e7   :  { %v1639_v60 = vsel %vm1638_vm0, %v2017_v37, %v1635_v42 }
0x22e8   :  { %v1644_v53 = vsel %vm1641_vm10, %v1643_v24, %v1639_v60 }
0x22e9   :  { %v1650_v52 = vmul.f32 %v1648_v57, %v1644_v53 }
0x2346   :  { %v1653_v50 = vpop.permute.xlu0 %1652 }
0x2347   :  { %v1655_v41 = vmul.f32 %v1653_v50, %v1644_v53 }
0x2349   :  { %1657 = vrot.lane.b32.xlu1 %v1655_v41, %s2043_s22 }
0x2351   :  { %1672 = vrot.lane.b32.xlu1 %v1671_v56, %s2042_s21 }
0x23bb   :  { %v1658_v54 = vpop.permute.xlu1 %1657 }
0x23bc   :  { %v1660_v44 = vadd.f32 %v1658_v54, %v1650_v52 }
0x23be   :  { %2018 = vtanh.f32 %v1660_v44 }
0x23c3   :  { %v1673_v34 = vpop.permute.xlu1 %1672 }
0x23c4   :  { %v2019_v0 = vpop.eup %2018 }
0x23c5   :  { %1663 = vrot.lane.b32.xlu2 %v2019_v0, %s2042_s21 }
0x241f   :  { %v1664_v48 = vpop.permute.xlu2 %1663 }
0x2420   :  { %v1666_v32 = vmul.f32 %v1664_v48, %v1644_v53 }
0x2422   :  { %1668 = vrot.lane.b32.xlu0 %v1666_v32, %s2043_s22 }
0x2494   :  { %v1669_v31 = vpop.permute.xlu0 %1668 }
0x2495   :  { %v1675_v58 = vsel %vm71_vm5, %v1669_v31, %v1673_v34 }
0x2496   :  { %v1677_v36 = vrot.slane %v1675_v58, 6 }
0x2498   :  { %1827 = vmatmul.msk.f32.vlgmr.msra.gmra.mxu3 %vm138_vm6, %v1677_v36 }
0x251b   :  { %v1697_v63 = vpop.f32.mrf.mxu3 }
0x251c   :  { %v1698_v29 = vadd.f32 %v2450_v35, %v1697_v63 }
0x251e   :  { %2020 = vtanh.f32 %v1698_v29  ;;  %v1828_v1 = vmul.f32 -1.442695, %v1698_v29 }
0x2520   :  { %2022 = vpow2.f32 %v1828_v1 }
0x2524   :  { %v2021_v3 = vpop.eup %2020 }
0x2525   :  { %1722 = vrot.lane.b32.xlu2 %v2021_v3, %s2042_s21 }
0x2526   :  { %v2023_v2 = vpop.eup %2022 }
0x2527   :  { %v1703_v49 = vadd.f32 1.0, %v2023_v2 }
0x2529   :  { %2024 = vrcp.f32 %v1703_v49  ;;  %v1715_v6 = vand.u32 2147483648, %v1703_v49  ;;  %vm1709_vm11 = vweird.f32 %v1703_v49  ;;  %v1713_v30 = vand.u32 2147483647, %v1703_v49 }
0x252b   :  { %v1716_v39 = vor.u32 1.1754944e-38, %v1715_v6  ;;  %vm1714_vm13 = vcmp.eq.f32.partialorder %v1713_v30, 8.507059e+37 }
0x252d   :  { %1748 = vrot.lane.b32.xlu2 %v1834_v51, %s2044_s27 }
0x252f   :  { %v2025_v59 = vpop.eup %2024 }
0x2530   :  { %v1705_v61 = vmul.f32 %v2025_v59, %v1703_v49  ;;  %vm1710_vm6 = vweird.f32 %v2025_v59 }
0x2531   :  { %vm1711_vm12 = vmor %vm1709_vm11, %vm1710_vm6 }
0x2532   :  { %v1706_v4 = vsub.f32 1.0, %v1705_v61 }
0x2534   :  { %v1707_v62 = vmul.f32 %v2025_v59, %v1706_v4 }
0x2536   :  { %v1708_v35 = vadd.f32 %v2025_v59, %v1707_v62 }
0x2538   :  { %v1712_v33 = vsel %vm1711_vm12, %v2025_v59, %v1708_v35 }
0x2539   :  { %v1717_v45 = vsel %vm1714_vm13, %v1716_v39, %v1712_v33 }
0x253a   :  { %v1720_v19 = vmul.f32 %v1717_v45, %v2593_v11 }
0x257f   :  { %v1723_v7 = vpop.permute.xlu2 %1722 }
0x2580   :  { %v1725_v8 = vmul.f32 %v1723_v7, %v1717_v45 }
0x2582   :  { %1727 = vrot.lane.b32.xlu0 %v1725_v8, %s2043_s22 }
0x2587   :  { %v1749_v15 = vpop.permute.xlu2 %1748 }
0x2588   :  { %v1751_v18 = vmul.f32 %v1749_v15, %v1745_v16 }
0x258a   :  { %1755 = vrot.lane.b32.xlu0 %v1751_v18, %s2043_s22 }
0x25f4   :  { %v1728_v14 = vpop.permute.xlu0 %1727 }
0x25f5   :  { %v1730_v12 = vadd.f32 %v1728_v14, %v1720_v19 }
0x25f7   :  { %2026 = vtanh.f32 %v1730_v12 }
0x25fc   :  { %v1756_v10 = vpop.permute.xlu0 %1755 }
0x25fd   :  { %v2027_v20 = vpop.eup %2026  ;;  %v1761_v21 = vsel %vm71_vm5, %v1756_v10, 0.0  ;;  %vm1764_vm5 = vcmask 254976  }
0x25fe   :  { %1733 = vrot.lane.b32.xlu1 %v2027_v20, %s2042_s21  ;;  %1762 = vadd.xlane.f32.xlu2 %v1761_v21 }
0x2670   :  { %v1734_v17 = vpop.permute.xlu1 %1733 }
0x2671   :  { %v1736_v46 = vmul.f32 %v1734_v17, %v1717_v45  ;;  %v1763_v5 = vpop.xlane.xlu2 %1762 }
0x2672   :  { %v1769_v55 = vadd.f32 %v1835_v22, %v1763_v5 }
0x2673   :  { %v1752_v11 = vmul.f32 %v1749_v15, %v1736_v46 }
0x2674   :  { %1772 = vst.msk [vmem:[%s2640_s2] sm:$0xff] %vm1771_vm2, %v1769_v55 }
0x2675   :  { %1757 = vrot.lane.b32.xlu1 %v1752_v11, %s2043_s22 }
0x26e7   :  { %v1758_v23 = vpop.permute.xlu1 %1757 }
0x26e8   :  { %v1765_v25 = vsel %vm1764_vm5, %v1758_v23, 0.0 }
0x26e9   :  { %1766 = vadd.xlane.f32.xlu0 %v1765_v25 }
0x275c   :  { %v1767_v26 = vpop.xlane.xlu0 %1766 }
0x275d   :  { %v1770_v27 = vadd.f32 %v1835_v22, %v1767_v26 }
0x275f   :  { %1774 = vst.msk [vmem:[%s2640_s2 + $0x8] sm:$0x3] %vm1773_vm3, %v1770_v27 }

</bundles_post_ra>
